<compile_context>
chip_gen: v5e
topology: v5e:2x2
jax: 0.10.0
libtpu: 0.0.40
codegen_flags: <defaults>
</compile_context>

<pallas_src>
import functools

import jax
import jax.numpy as jnp
from jax import lax
from jax.experimental import pallas as pl
from jax.experimental.pallas import tpu as pltpu


# ----------------------------------------------------------------------------
# Fused MHA kernel: one grid step = (one batch row, one query-row tile),
# all heads.  Scratch: cached K/V projections (reused across query tiles of
# the same batch row) and a lane-dense merged-heads buffer feeding fc.
# ----------------------------------------------------------------------------
def _mha_fused_kernel(
    q_ref,       # (1, TQ, d_model)  f32 -- also the residual
    k_ref,       # (1, Lk, d_model)  f32
    v_ref,       # (1, Lv, d_model)  f32
    wqkv_ref,    # (d_model, 2*H*d_k + H*d_v) compute dtype, 1/sqrt(d_k) folded in Wq
    wfc_ref,     # (H*d_v, d_model)  compute dtype
    gamma_ref,   # (1, d_model) f32
    beta_ref,    # (1, d_model) f32
    o_ref,       # (1, TQ, d_model)
    *rest,       # [attn_ref (1,H,TQ,Lk)]?, kp_scratch, vp_scratch, merged_scratch
    n_head, d_k, d_v, eps, compute_dtype, return_attn,
):
    if return_attn:
        attn_ref, kp_ref, vp_ref, merged_ref = rest
    else:
        attn_ref = None
        kp_ref, vp_ref, merged_ref = rest

    cd = compute_dtype
    n_qk = n_head * d_k
    qi = pl.program_id(1)

    # ---- K/V projections: compute once per batch row, cache in VMEM scratch.
    @pl.when(qi == 0)
    def _():
        xk = k_ref[0].astype(cd)                            # (Lk, d_model)
        xv = v_ref[0].astype(cd)                            # (Lv, d_model)
        kp_ref[...] = jnp.dot(xk, wqkv_ref[:, n_qk:2 * n_qk],
                              preferred_element_type=jnp.float32).astype(cd)
        vp_ref[...] = jnp.dot(xv, wqkv_ref[:, 2 * n_qk:],
                              preferred_element_type=jnp.float32).astype(cd)

    # ---- Q projection for this query tile (scale already folded into Wq).
    xq_f32 = q_ref[0]                                       # (TQ, d_model), residual
    qp = jnp.dot(xq_f32.astype(cd), wqkv_ref[:, :n_qk],
                 preferred_element_type=jnp.float32)        # (TQ, H*d_k) f32

    # ---- Per-head scaled-dot-product attention (static unroll; one head's
    #      scores/probs live at a time; outputs written to merged scratch).
    for h in range(n_head):
        q_h = qp[:, h * d_k:(h + 1) * d_k].astype(cd)       # (TQ, d_k)
        k_h = kp_ref[:, h * d_k:(h + 1) * d_k]              # (Lk, d_k)
        v_h = vp_ref[:, h * d_v:(h + 1) * d_v]              # (Lk, d_v)

        scores = lax.dot_general(                           # (TQ, Lk) f32
            q_h, k_h, (((1,), (1,)), ((), ())),
            preferred_element_type=jnp.float32)

        m = jnp.max(scores, axis=-1, keepdims=True)
        p = jnp.exp(scores - m)
        denom = jnp.sum(p, axis=-1, keepdims=True)
        attn_h = p * pl.reciprocal(denom)                   # exact reciprocal

        merged_ref[:, h * d_v:(h + 1) * d_v] = jnp.dot(
            attn_h.astype(cd), v_h,
            preferred_element_type=jnp.float32).astype(cd)

        if attn_ref is not None:
            attn_ref[0, h] = attn_h.astype(attn_ref.dtype)

    # ---- fc (no bias) + residual + LayerNorm(eps), all in f32.
    y = jnp.dot(merged_ref[...], wfc_ref[...],
                preferred_element_type=jnp.float32)         # (TQ, d_model)
    y = y + xq_f32
    mean = jnp.mean(y, axis=-1, keepdims=True)
    var = jnp.mean(jnp.square(y - mean), axis=-1, keepdims=True)
    y = (y - mean) * lax.rsqrt(var + eps)
    y = y * gamma_ref[...] + beta_ref[...]
    o_ref[0] = y.astype(o_ref.dtype)


# ----------------------------------------------------------------------------
# Helpers
# ----------------------------------------------------------------------------
def _pick_tile_q(lq, return_attn):
    """Query-row tile: full Lq when small, otherwise a divisor that is a
    multiple of 8.  Capped lower when the (H, TQ, Lk) attention-prob block is
    materialized (it dominates VMEM; keeps v7x's 64 MiB budget)."""
    cap = 128 if return_attn else 256
    if lq <= cap:
        return lq
    for t in (256, 128, 64, 32, 16, 8):
        if t <= cap and lq % t == 0:
            return t
    return lq


def _vmem_limit_bytes():
    """~80% of physical VMEM (leaves headroom for compiler scratch / spills):
    ~102 MiB on v5e/v6e (128 MiB physical), ~51 MiB on v7x (64 MiB)."""
    try:
        cap = getattr(pltpu.get_tpu_info(), "vmem_capacity_bytes", None)
        if cap:
            return int(cap) * 4 // 5
    except Exception:
        pass
    return 48 * 1024 * 1024  # conservative default that fits every generation


def prepare_params(params, compute_dtype=jnp.bfloat16):
    """One-time weight prep: transpose, fold 1/sqrt(d_k) into Wq, concatenate
    [Wq|Wk|Wv], cast to the compute dtype.  Do this once, not per forward."""
    n_head, d_k, d_v = params["n_head"], params["d_k"], params["d_v"]
    d_model = params["w_qs"].shape[1]
    inv_temp = 1.0 / float(d_k ** 0.5)
    wqkv = jnp.concatenate(
        [params["w_qs"].T * inv_temp, params["w_ks"].T, params["w_vs"].T],
        axis=1).astype(compute_dtype)                       # (d_model, 2Hd_k + Hd_v)
    return {
        "n_head": n_head, "d_k": d_k, "d_v": d_v,
        "compute_dtype": compute_dtype,
        "wqkv": wqkv,
        "wfc": params["fc"].T.astype(compute_dtype),        # (H*d_v, d_model)
        "gamma": params["ln_gamma"].reshape(1, d_model).astype(jnp.float32),
        "beta": params["ln_beta"].reshape(1, d_model).astype(jnp.float32),
    }


# ----------------------------------------------------------------------------
# Wrapper: one pallas_call for the whole MHA forward.
# ----------------------------------------------------------------------------
def multi_head_attention(prepared, q, k, v, *, return_attn=False,
                         attn_dtype=jnp.bfloat16, tile_q=None):
    """q, k, v: (B, L, d_model) float32.  Returns (output, attn) like the
    PyTorch module; attn is None when return_attn=False (default, much
    cheaper).  attn_dtype=jnp.float32 for exact reference dtype."""
    n_head, d_k, d_v = prepared["n_head"], prepared["d_k"], prepared["d_v"]
    cd = prepared["compute_dtype"]
    wqkv, wfc = prepared["wqkv"], prepared["wfc"]
    gamma, beta = prepared["gamma"], prepared["beta"]

    B, Lq, d_model = q.shape
    Lk, Lv = k.shape[1], v.shape[1]
    assert Lk == Lv, "key/value sequence lengths must match"
    n_qkv = wqkv.shape[1]
    assert n_qkv == 2 * n_head * d_k + n_head * d_v

    TQ = tile_q if tile_q is not None else _pick_tile_q(Lq, return_attn)
    assert Lq % TQ == 0 and (TQ == Lq or TQ % 8 == 0)
    nq = Lq // TQ

    kernel = functools.partial(
        _mha_fused_kernel,
        n_head=n_head, d_k=d_k, d_v=d_v, eps=1e-6,
        compute_dtype=cd, return_attn=return_attn)

    o_spec = pl.BlockSpec((1, TQ, d_model), lambda b, qi: (b, qi, 0))
    if return_attn:
        out_shape = (
            jax.ShapeDtypeStruct((B, Lq, d_model), q.dtype),
            jax.ShapeDtypeStruct((B, n_head, Lq, Lk), attn_dtype),
        )
        out_specs = (
            o_spec,
            pl.BlockSpec((1, n_head, TQ, Lk), lambda b, qi: (b, 0, qi, 0)),
        )
    else:
        out_shape = jax.ShapeDtypeStruct((B, Lq, d_model), q.dtype)
        out_specs = o_spec

    scratch_shapes = [
        pltpu.VMEM((Lk, n_head * d_k), cd),   # cached K projection (per batch row)
        pltpu.VMEM((Lk, n_head * d_v), cd),   # cached V projection (per batch row)
        pltpu.VMEM((TQ, n_head * d_v), cd),   # merged per-head outputs (fc input)
    ]

    def run(single_buffer_resident):
        # Grid-invariant operands never change along the inner (qi) axis;
        # single-buffer them to free ~half the resident VMEM.
        resident = ({"pipeline_mode": pl.Buffered(1)}
                    if single_buffer_resident else {})
        in_specs = [
            pl.BlockSpec((1, TQ, d_model), lambda b, qi: (b, qi, 0)),
            pl.BlockSpec((1, Lk, d_model), lambda b, qi: (b, 0, 0), **resident),
            pl.BlockSpec((1, Lv, d_model), lambda b, qi: (b, 0, 0), **resident),
            pl.BlockSpec((d_model, n_qkv), lambda b, qi: (0, 0), **resident),
            pl.BlockSpec((n_head * d_v, d_model), lambda b, qi: (0, 0), **resident),
            pl.BlockSpec((1, d_model), lambda b, qi: (0, 0), **resident),
            pl.BlockSpec((1, d_model), lambda b, qi: (0, 0), **resident),
        ]
        return pl.pallas_call(
            kernel,
            out_shape=out_shape,
            grid=(B, nq),
            in_specs=in_specs,
            out_specs=out_specs,
            scratch_shapes=scratch_shapes,
            compiler_params=pltpu.CompilerParams(
                # b: megacore-shardable; qi: "arbitrary" (K/V projection cache
                # requires sequential qi within a batch row).
                dimension_semantics=("parallel", "arbitrary"),
                vmem_limit_bytes=_vmem_limit_bytes(),
            ),
        )(q, k, v, wqkv, wfc, gamma, beta)

    try:
        result = run(True)
    except Exception:  # fallback if this jax rejects pipeline_mode=Buffered(1)
        result = run(False)

    if return_attn:
        out, attn = result
        return out, attn
    return result, None


# ----------------------------------------------------------------------------
# Parameter init (PyTorch layout) and pure-JAX reference for validation.
# ----------------------------------------------------------------------------
def init_params(key, n_head, d_model, d_k, d_v):
    k1, k2, k3, k4 = jax.random.split(key, 4)
    scale = 1.0 / (d_model ** 0.5)
    return {
        "n_head": n_head, "d_k": d_k, "d_v": d_v,
        # nn.Linear weight layout: (out_features, in_features)
        "w_qs": jax.random.normal(k1, (n_head * d_k, d_model), jnp.float32) * scale,
        "w_ks": jax.random.normal(k2, (n_head * d_k, d_model), jnp.float32) * scale,
        "w_vs": jax.random.normal(k3, (n_head * d_v, d_model), jnp.float32) * scale,
        "fc": jax.random.normal(k4, (d_model, n_head * d_v), jnp.float32)
        * (1.0 / ((n_head * d_v) ** 0.5)),
        # nn.LayerNorm defaults: weight=1, bias=0
        "ln_gamma": jnp.ones((d_model,), jnp.float32),
        "ln_beta": jnp.zeros((d_model,), jnp.float32),
    }


def mha_reference(params, q, k, v):
    """Pure-JAX port of the PyTorch forward (mask=None)."""
    n_head, d_k, d_v = params["n_head"], params["d_k"], params["d_v"]
    B, Lq, _ = q.shape
    Lk = k.shape[1]
    qp = (q @ params["w_qs"].T).reshape(B, Lq, n_head, d_k).transpose(0, 2, 1, 3)
    kp = (k @ params["w_ks"].T).reshape(B, Lk, n_head, d_k).transpose(0, 2, 1, 3)
    vp = (v @ params["w_vs"].T).reshape(B, Lk, n_head, d_v).transpose(0, 2, 1, 3)
    scores = jnp.einsum("bhqd,bhkd->bhqk", qp / (d_k ** 0.5), kp)
    attn = jax.nn.softmax(scores, axis=-1)
    out = jnp.einsum("bhqk,bhkd->bhqd", attn, vp)
    out = out.transpose(0, 2, 1, 3).reshape(B, Lq, n_head * d_v)
    out = out @ params["fc"].T + q
    mean = out.mean(-1, keepdims=True)
    var = ((out - mean) ** 2).mean(-1, keepdims=True)
    out = (out - mean) / jnp.sqrt(var + 1e-6)
    out = out * params["ln_gamma"] + params["ln_beta"]
    return out, attn


if __name__ == "__main__":
    key = jax.random.PRNGKey(0)
    pkey, qk, kk, vk = jax.random.split(key, 4)

    B, L, d_model = 2, 8, 32
    n_head, d_k, d_v = 4, 8, 8

    params = init_params(pkey, n_head, d_model, d_k, d_v)
    q = jax.random.normal(qk, (B, L, d_model), jnp.float32)
    k = jax.random.normal(kk, (B, L, d_model), jnp.float32)
    v = jax.random.normal(vk, (B, L, d_model), jnp.float32)

    out_ref, attn_ref = mha_reference(params, q, k, v)

    # 1) f32 compute, attention probs returned (full reference semantics).
    prep_f32 = prepare_params(params, compute_dtype=jnp.float32)
    out, attn = multi_head_attention(prep_f32, q, k, v,
                                     return_attn=True, attn_dtype=jnp.float32)
    jax.block_until_ready((out, attn))
    assert out.shape == (B, L, d_model)
    assert attn.shape == (B, n_head, L, L)
    assert float(jnp.max(jnp.abs(out - out_ref))) < 0.15
    assert float(jnp.max(jnp.abs(attn - attn_ref))) < 0.1

    # 2) default fast path: bf16 compute, no attention-prob output.
    prep_bf16 = prepare_params(params)  # compute_dtype = bf16
    out2, attn2 = multi_head_attention(prep_bf16, q, k, v)
    jax.block_until_ready(out2)
    assert attn2 is None
    assert out2.shape == (B, L, d_model)
    assert float(jnp.max(jnp.abs(out2 - out_ref))) < 0.25

    # 3) multiple query tiles: exercises the cached K/V projections across qi.
    L2 = 32
    q2 = jax.random.normal(jax.random.PRNGKey(1), (B, L2, d_model), jnp.float32)
    k2 = jax.random.normal(jax.random.PRNGKey(2), (B, L2, d_model), jnp.float32)
    v2 = jax.random.normal(jax.random.PRNGKey(3), (B, L2, d_model), jnp.float32)
    out3_ref, _ = mha_reference(params, q2, k2, v2)
    out3, _ = multi_head_attention(prep_f32, q2, k2, v2, tile_q=8)
    jax.block_until_ready(out3)
    assert out3.shape == (B, L2, d_model)
    assert float(jnp.max(jnp.abs(out3 - out3_ref))) < 0.15

    print("KERNEL_OK")
</pallas_src>

<mosaic_0001>
module attributes {stable_mosaic.version = 11 : i64} {
  func.func @_mha_fused_kernel(%arg0: i32, %arg1: i32, %arg2: memref<1x8x32xf32, #tpu.memory_space<vmem>>, %arg3: memref<1x8x32xf32, #tpu.memory_space<vmem>>, %arg4: memref<1x8x32xf32, #tpu.memory_space<vmem>>, %arg5: memref<32x96xf32, #tpu.memory_space<vmem>>, %arg6: memref<32x32xf32, #tpu.memory_space<vmem>>, %arg7: memref<1x32xf32, #tpu.memory_space<vmem>>, %arg8: memref<1x32xf32, #tpu.memory_space<vmem>>, %arg9: memref<1x8x32xf32, #tpu.memory_space<vmem>>, %arg10: memref<1x4x8x8xf32, #tpu.memory_space<vmem>>, %arg11: memref<8x32xf32, #tpu.memory_space<vmem>>, %arg12: memref<8x32xf32, #tpu.memory_space<vmem>>, %arg13: memref<8x32xf32, #tpu.memory_space<vmem>>) attributes {dimension_semantics = [#tpu.dimension_semantics<parallel>, #tpu.dimension_semantics<arbitrary>], iteration_bounds = array<i64: 2, 1>, scalar_prefetch = 0 : i64, scratch_operands = 3 : i64, tpu.core_type = #tpu.core_type<tc>, window_params = [{transform_indices = @transform_0, window_bounds = array<i64: 1, 8, 32>}, {pipeline_mode = #tpu.pipeline_mode<synchronous>, transform_indices = @transform_1, window_bounds = array<i64: 1, 8, 32>}, {pipeline_mode = #tpu.pipeline_mode<synchronous>, transform_indices = @transform_2, window_bounds = array<i64: 1, 8, 32>}, {pipeline_mode = #tpu.pipeline_mode<synchronous>, transform_indices = @transform_3, window_bounds = array<i64: 32, 96>}, {pipeline_mode = #tpu.pipeline_mode<synchronous>, transform_indices = @transform_4, window_bounds = array<i64: 32, 32>}, {pipeline_mode = #tpu.pipeline_mode<synchronous>, transform_indices = @transform_5, window_bounds = array<i64: 1, 32>}, {pipeline_mode = #tpu.pipeline_mode<synchronous>, transform_indices = @transform_6, window_bounds = array<i64: 1, 32>}, {transform_indices = @transform_7, window_bounds = array<i64: 1, 8, 32>}, {transform_indices = @transform_8, window_bounds = array<i64: 1, 4, 8, 8>}]} {
    %c0_i32 = arith.constant 0 : i32
    %0 = arith.cmpi eq, %arg1, %c0_i32 : i32
    %1 = arith.extui %0 : i1 to i32
    %c0_i32_0 = arith.constant 0 : i32
    %2 = arith.cmpi ne, %1, %c0_i32_0 : i32
    scf.if %2 {
      %c0_72 = arith.constant 0 : index
      %c0_73 = arith.constant 0 : index
      %c0_74 = arith.constant 0 : index
      %114 = vector.load %arg3[%c0_72, %c0_73, %c0_74] : memref<1x8x32xf32, #tpu.memory_space<vmem>>, vector<1x8x32xf32>
      %115 = vector.shape_cast %114 : vector<1x8x32xf32> to vector<8x32xf32>
      %c0_75 = arith.constant 0 : index
      %c0_76 = arith.constant 0 : index
      %c0_77 = arith.constant 0 : index
      %116 = vector.load %arg4[%c0_75, %c0_76, %c0_77] : memref<1x8x32xf32, #tpu.memory_space<vmem>>, vector<1x8x32xf32>
      %117 = vector.shape_cast %116 : vector<1x8x32xf32> to vector<8x32xf32>
      %c0_78 = arith.constant 0 : index
      %c32 = arith.constant 32 : index
      %118 = vector.load %arg5[%c0_78, %c32] : memref<32x96xf32, #tpu.memory_space<vmem>>, vector<32x32xf32>
      %cst_79 = arith.constant dense<0.000000e+00> : vector<8x32xf32>
      %119 = tpu.matmul %115, %118, %cst_79 {dimension_numbers = #tpu.dot_dimension_numbers<[1], [0], [0], [1], [0, 0, 1, 1], [], []>} : vector<8x32xf32>, vector<32x32xf32>, vector<8x32xf32> -> vector<8x32xf32>
      %c0_80 = arith.constant 0 : index
      %c0_81 = arith.constant 0 : index
      %120 = vector.load %arg11[%c0_80, %c0_81] : memref<8x32xf32, #tpu.memory_space<vmem>>, vector<8x32xf32>
      tpu.vector_store %arg11[%c0_80, %c0_81], %119 {strides = array<i32>} : memref<8x32xf32, #tpu.memory_space<vmem>>, vector<8x32xf32>,
      %c0_82 = arith.constant 0 : index
      %c64 = arith.constant 64 : index
      %121 = vector.load %arg5[%c0_82, %c64] : memref<32x96xf32, #tpu.memory_space<vmem>>, vector<32x32xf32>
      %cst_83 = arith.constant dense<0.000000e+00> : vector<8x32xf32>
      %122 = tpu.matmul %117, %121, %cst_83 {dimension_numbers = #tpu.dot_dimension_numbers<[1], [0], [0], [1], [0, 0, 1, 1], [], []>} : vector<8x32xf32>, vector<32x32xf32>, vector<8x32xf32> -> vector<8x32xf32>
      %c0_84 = arith.constant 0 : index
      %c0_85 = arith.constant 0 : index
      %123 = vector.load %arg12[%c0_84, %c0_85] : memref<8x32xf32, #tpu.memory_space<vmem>>, vector<8x32xf32>
      tpu.vector_store %arg12[%c0_84, %c0_85], %122 {strides = array<i32>} : memref<8x32xf32, #tpu.memory_space<vmem>>, vector<8x32xf32>,
    } else {
    }
    %c0 = arith.constant 0 : index
    %c0_1 = arith.constant 0 : index
    %c0_2 = arith.constant 0 : index
    %3 = vector.load %arg2[%c0, %c0_1, %c0_2] : memref<1x8x32xf32, #tpu.memory_space<vmem>>, vector<1x8x32xf32>
    %4 = vector.shape_cast %3 : vector<1x8x32xf32> to vector<8x32xf32>
    %c0_3 = arith.constant 0 : index
    %c0_4 = arith.constant 0 : index
    %5 = vector.load %arg5[%c0_3, %c0_4] : memref<32x96xf32, #tpu.memory_space<vmem>>, vector<32x32xf32>
    %cst = arith.constant dense<0.000000e+00> : vector<8x32xf32>
    %6 = tpu.matmul %4, %5, %cst {dimension_numbers = #tpu.dot_dimension_numbers<[1], [0], [0], [1], [0, 0, 1, 1], [], []>} : vector<8x32xf32>, vector<32x32xf32>, vector<8x32xf32> -> vector<8x32xf32>
    %7 = vector.extract_strided_slice %6 {offsets = [0, 0], sizes = [8, 8], strides = [1, 1]} : vector<8x32xf32> to vector<8x8xf32>
    %c0_5 = arith.constant 0 : index
    %c0_6 = arith.constant 0 : index
    %8 = vector.load %arg11[%c0_5, %c0_6] : memref<8x32xf32, #tpu.memory_space<vmem>>, vector<8x8xf32>
    %c0_7 = arith.constant 0 : index
    %c0_8 = arith.constant 0 : index
    %9 = vector.load %arg12[%c0_7, %c0_8] : memref<8x32xf32, #tpu.memory_space<vmem>>, vector<8x8xf32>
    %cst_9 = arith.constant dense<0.000000e+00> : vector<8x8xf32>
    %10 = tpu.matmul %7, %8, %cst_9 {dimension_numbers = #tpu.dot_dimension_numbers<[1], [1], [0], [0], [0, 0, 1, 0], [], []>} : vector<8x8xf32>, vector<8x8xf32>, vector<8x8xf32> -> vector<8x8xf32>
    %cst_10 = arith.constant dense<0xFF800000> : vector<8xf32>
    %11 = vector.multi_reduction <maximumf>, %10, %cst_10 [1] : vector<8x8xf32> to vector<8xf32>
    %12 = vector.shape_cast %11 : vector<8xf32> to vector<8x1xf32>
    %13 = vector.broadcast %12 : vector<8x1xf32> to vector<8x8xf32>
    %14 = arith.subf %10, %13 : vector<8x8xf32>
    %15 = math.exp %14 : vector<8x8xf32>
    %cst_11 = arith.constant dense<0.000000e+00> : vector<8xf32>
    %16 = vector.multi_reduction <add>, %15, %cst_11 [1] : vector<8x8xf32> to vector<8xf32>
    %17 = vector.shape_cast %16 : vector<8xf32> to vector<8x1xf32>
    %18 = tpu.reciprocal %17 : vector<8x1xf32> -> vector<8x1xf32>
    %19 = vector.broadcast %18 : vector<8x1xf32> to vector<8x8xf32>
    %20 = arith.mulf %15, %19 : vector<8x8xf32>
    %cst_12 = arith.constant dense<0.000000e+00> : vector<8x8xf32>
    %21 = tpu.matmul %20, %9, %cst_12 {dimension_numbers = #tpu.dot_dimension_numbers<[1], [0], [0], [1], [0, 0, 1, 1], [], []>} : vector<8x8xf32>, vector<8x8xf32>, vector<8x8xf32> -> vector<8x8xf32>
    %c0_13 = arith.constant 0 : index
    %c0_14 = arith.constant 0 : index
    %22 = vector.load %arg13[%c0_13, %c0_14] : memref<8x32xf32, #tpu.memory_space<vmem>>, vector<8x8xf32>
    tpu.vector_store %arg13[%c0_13, %c0_14], %21 {strides = array<i32>} : memref<8x32xf32, #tpu.memory_space<vmem>>, vector<8x8xf32>,
    %c0_15 = arith.constant 0 : index
    %c0_16 = arith.constant 0 : index
    %c0_17 = arith.constant 0 : index
    %c0_18 = arith.constant 0 : index
    %23 = vector.load %arg10[%c0_15, %c0_16, %c0_17, %c0_18] : memref<1x4x8x8xf32, #tpu.memory_space<vmem>>, vector<1x1x8x8xf32>
    %24 = vector.shape_cast %23 : vector<1x1x8x8xf32> to vector<8x8xf32>
    %25 = vector.shape_cast %20 : vector<8x8xf32> to vector<1x1x8x8xf32>
    tpu.vector_store %arg10[%c0_15, %c0_16, %c0_17, %c0_18], %25 {strides = array<i32>} : memref<1x4x8x8xf32, #tpu.memory_space<vmem>>, vector<1x1x8x8xf32>,
    %26 = vector.extract_strided_slice %6 {offsets = [0, 8], sizes = [8, 8], strides = [1, 1]} : vector<8x32xf32> to vector<8x8xf32>
    %c0_19 = arith.constant 0 : index
    %c8 = arith.constant 8 : index
    %27 = vector.load %arg11[%c0_19, %c8] : memref<8x32xf32, #tpu.memory_space<vmem>>, vector<8x8xf32>
    %c0_20 = arith.constant 0 : index
    %c8_21 = arith.constant 8 : index
    %28 = vector.load %arg12[%c0_20, %c8_21] : memref<8x32xf32, #tpu.memory_space<vmem>>, vector<8x8xf32>
    %cst_22 = arith.constant dense<0.000000e+00> : vector<8x8xf32>
    %29 = tpu.matmul %26, %27, %cst_22 {dimension_numbers = #tpu.dot_dimension_numbers<[1], [1], [0], [0], [0, 0, 1, 0], [], []>} : vector<8x8xf32>, vector<8x8xf32>, vector<8x8xf32> -> vector<8x8xf32>
    %cst_23 = arith.constant dense<0xFF800000> : vector<8xf32>
    %30 = vector.multi_reduction <maximumf>, %29, %cst_23 [1] : vector<8x8xf32> to vector<8xf32>
    %31 = vector.shape_cast %30 : vector<8xf32> to vector<8x1xf32>
    %32 = vector.broadcast %31 : vector<8x1xf32> to vector<8x8xf32>
    %33 = arith.subf %29, %32 : vector<8x8xf32>
    %34 = math.exp %33 : vector<8x8xf32>
    %cst_24 = arith.constant dense<0.000000e+00> : vector<8xf32>
    %35 = vector.multi_reduction <add>, %34, %cst_24 [1] : vector<8x8xf32> to vector<8xf32>
    %36 = vector.shape_cast %35 : vector<8xf32> to vector<8x1xf32>
    %37 = tpu.reciprocal %36 : vector<8x1xf32> -> vector<8x1xf32>
    %38 = vector.broadcast %37 : vector<8x1xf32> to vector<8x8xf32>
    %39 = arith.mulf %34, %38 : vector<8x8xf32>
    %cst_25 = arith.constant dense<0.000000e+00> : vector<8x8xf32>
    %40 = tpu.matmul %39, %28, %cst_25 {dimension_numbers = #tpu.dot_dimension_numbers<[1], [0], [0], [1], [0, 0, 1, 1], [], []>} : vector<8x8xf32>, vector<8x8xf32>, vector<8x8xf32> -> vector<8x8xf32>
    %c0_26 = arith.constant 0 : index
    %c8_27 = arith.constant 8 : index
    %41 = vector.load %arg13[%c0_26, %c8_27] : memref<8x32xf32, #tpu.memory_space<vmem>>, vector<8x8xf32>
    tpu.vector_store %arg13[%c0_26, %c8_27], %40 {strides = array<i32>} : memref<8x32xf32, #tpu.memory_space<vmem>>, vector<8x8xf32>,
    %c0_28 = arith.constant 0 : index
    %c1 = arith.constant 1 : index
    %c0_29 = arith.constant 0 : index
    %c0_30 = arith.constant 0 : index
    %42 = vector.load %arg10[%c0_28, %c1, %c0_29, %c0_30] : memref<1x4x8x8xf32, #tpu.memory_space<vmem>>, vector<1x1x8x8xf32>
    %43 = vector.shape_cast %42 : vector<1x1x8x8xf32> to vector<8x8xf32>
    %44 = vector.shape_cast %39 : vector<8x8xf32> to vector<1x1x8x8xf32>
    tpu.vector_store %arg10[%c0_28, %c1, %c0_29, %c0_30], %44 {strides = array<i32>} : memref<1x4x8x8xf32, #tpu.memory_space<vmem>>, vector<1x1x8x8xf32>,
    %45 = vector.extract_strided_slice %6 {offsets = [0, 16], sizes = [8, 8], strides = [1, 1]} : vector<8x32xf32> to vector<8x8xf32>
    %c0_31 = arith.constant 0 : index
    %c16 = arith.constant 16 : index
    %46 = vector.load %arg11[%c0_31, %c16] : memref<8x32xf32, #tpu.memory_space<vmem>>, vector<8x8xf32>
    %c0_32 = arith.constant 0 : index
    %c16_33 = arith.constant 16 : index
    %47 = vector.load %arg12[%c0_32, %c16_33] : memref<8x32xf32, #tpu.memory_space<vmem>>, vector<8x8xf32>
    %cst_34 = arith.constant dense<0.000000e+00> : vector<8x8xf32>
    %48 = tpu.matmul %45, %46, %cst_34 {dimension_numbers = #tpu.dot_dimension_numbers<[1], [1], [0], [0], [0, 0, 1, 0], [], []>} : vector<8x8xf32>, vector<8x8xf32>, vector<8x8xf32> -> vector<8x8xf32>
    %cst_35 = arith.constant dense<0xFF800000> : vector<8xf32>
    %49 = vector.multi_reduction <maximumf>, %48, %cst_35 [1] : vector<8x8xf32> to vector<8xf32>
    %50 = vector.shape_cast %49 : vector<8xf32> to vector<8x1xf32>
    %51 = vector.broadcast %50 : vector<8x1xf32> to vector<8x8xf32>
    %52 = arith.subf %48, %51 : vector<8x8xf32>
    %53 = math.exp %52 : vector<8x8xf32>
    %cst_36 = arith.constant dense<0.000000e+00> : vector<8xf32>
    %54 = vector.multi_reduction <add>, %53, %cst_36 [1] : vector<8x8xf32> to vector<8xf32>
    %55 = vector.shape_cast %54 : vector<8xf32> to vector<8x1xf32>
    %56 = tpu.reciprocal %55 : vector<8x1xf32> -> vector<8x1xf32>
    %57 = vector.broadcast %56 : vector<8x1xf32> to vector<8x8xf32>
    %58 = arith.mulf %53, %57 : vector<8x8xf32>
    %cst_37 = arith.constant dense<0.000000e+00> : vector<8x8xf32>
    %59 = tpu.matmul %58, %47, %cst_37 {dimension_numbers = #tpu.dot_dimension_numbers<[1], [0], [0], [1], [0, 0, 1, 1], [], []>} : vector<8x8xf32>, vector<8x8xf32>, vector<8x8xf32> -> vector<8x8xf32>
    %c0_38 = arith.constant 0 : index
    %c16_39 = arith.constant 16 : index
    %60 = vector.load %arg13[%c0_38, %c16_39] : memref<8x32xf32, #tpu.memory_space<vmem>>, vector<8x8xf32>
    tpu.vector_store %arg13[%c0_38, %c16_39], %59 {strides = array<i32>} : memref<8x32xf32, #tpu.memory_space<vmem>>, vector<8x8xf32>,
    %c0_40 = arith.constant 0 : index
    %c2 = arith.constant 2 : index
    %c0_41 = arith.constant 0 : index
    %c0_42 = arith.constant 0 : index
    %61 = vector.load %arg10[%c0_40, %c2, %c0_41, %c0_42] : memref<1x4x8x8xf32, #tpu.memory_space<vmem>>, vector<1x1x8x8xf32>
    %62 = vector.shape_cast %61 : vector<1x1x8x8xf32> to vector<8x8xf32>
    %63 = vector.shape_cast %58 : vector<8x8xf32> to vector<1x1x8x8xf32>
    tpu.vector_store %arg10[%c0_40, %c2, %c0_41, %c0_42], %63 {strides = array<i32>} : memref<1x4x8x8xf32, #tpu.memory_space<vmem>>, vector<1x1x8x8xf32>,
    %64 = vector.extract_strided_slice %6 {offsets = [0, 24], sizes = [8, 8], strides = [1, 1]} : vector<8x32xf32> to vector<8x8xf32>
    %c0_43 = arith.constant 0 : index
    %c24 = arith.constant 24 : index
    %65 = vector.load %arg11[%c0_43, %c24] : memref<8x32xf32, #tpu.memory_space<vmem>>, vector<8x8xf32>
    %c0_44 = arith.constant 0 : index
    %c24_45 = arith.constant 24 : index
    %66 = vector.load %arg12[%c0_44, %c24_45] : memref<8x32xf32, #tpu.memory_space<vmem>>, vector<8x8xf32>
    %cst_46 = arith.constant dense<0.000000e+00> : vector<8x8xf32>
    %67 = tpu.matmul %64, %65, %cst_46 {dimension_numbers = #tpu.dot_dimension_numbers<[1], [1], [0], [0], [0, 0, 1, 0], [], []>} : vector<8x8xf32>, vector<8x8xf32>, vector<8x8xf32> -> vector<8x8xf32>
    %cst_47 = arith.constant dense<0xFF800000> : vector<8xf32>
    %68 = vector.multi_reduction <maximumf>, %67, %cst_47 [1] : vector<8x8xf32> to vector<8xf32>
    %69 = vector.shape_cast %68 : vector<8xf32> to vector<8x1xf32>
    %70 = vector.broadcast %69 : vector<8x1xf32> to vector<8x8xf32>
    %71 = arith.subf %67, %70 : vector<8x8xf32>
    %72 = math.exp %71 : vector<8x8xf32>
    %cst_48 = arith.constant dense<0.000000e+00> : vector<8xf32>
    %73 = vector.multi_reduction <add>, %72, %cst_48 [1] : vector<8x8xf32> to vector<8xf32>
    %74 = vector.shape_cast %73 : vector<8xf32> to vector<8x1xf32>
    %75 = tpu.reciprocal %74 : vector<8x1xf32> -> vector<8x1xf32>
    %76 = vector.broadcast %75 : vector<8x1xf32> to vector<8x8xf32>
    %77 = arith.mulf %72, %76 : vector<8x8xf32>
    %cst_49 = arith.constant dense<0.000000e+00> : vector<8x8xf32>
    %78 = tpu.matmul %77, %66, %cst_49 {dimension_numbers = #tpu.dot_dimension_numbers<[1], [0], [0], [1], [0, 0, 1, 1], [], []>} : vector<8x8xf32>, vector<8x8xf32>, vector<8x8xf32> -> vector<8x8xf32>
    %c0_50 = arith.constant 0 : index
    %c24_51 = arith.constant 24 : index
    %79 = vector.load %arg13[%c0_50, %c24_51] : memref<8x32xf32, #tpu.memory_space<vmem>>, vector<8x8xf32>
    tpu.vector_store %arg13[%c0_50, %c24_51], %78 {strides = array<i32>} : memref<8x32xf32, #tpu.memory_space<vmem>>, vector<8x8xf32>,
    %c0_52 = arith.constant 0 : index
    %c3 = arith.constant 3 : index
    %c0_53 = arith.constant 0 : index
    %c0_54 = arith.constant 0 : index
    %80 = vector.load %arg10[%c0_52, %c3, %c0_53, %c0_54] : memref<1x4x8x8xf32, #tpu.memory_space<vmem>>, vector<1x1x8x8xf32>
    %81 = vector.shape_cast %80 : vector<1x1x8x8xf32> to vector<8x8xf32>
    %82 = vector.shape_cast %77 : vector<8x8xf32> to vector<1x1x8x8xf32>
    tpu.vector_store %arg10[%c0_52, %c3, %c0_53, %c0_54], %82 {strides = array<i32>} : memref<1x4x8x8xf32, #tpu.memory_space<vmem>>, vector<1x1x8x8xf32>,
    %c0_55 = arith.constant 0 : index
    %c0_56 = arith.constant 0 : index
    %83 = vector.load %arg13[%c0_55, %c0_56] : memref<8x32xf32, #tpu.memory_space<vmem>>, vector<8x32xf32>
    %c0_57 = arith.constant 0 : index
    %c0_58 = arith.constant 0 : index
    %84 = vector.load %arg6[%c0_57, %c0_58] : memref<32x32xf32, #tpu.memory_space<vmem>>, vector<32x32xf32>
    %cst_59 = arith.constant dense<0.000000e+00> : vector<8x32xf32>
    %85 = tpu.matmul %83, %84, %cst_59 {dimension_numbers = #tpu.dot_dimension_numbers<[1], [0], [0], [1], [0, 0, 1, 1], [], []>} : vector<8x32xf32>, vector<32x32xf32>, vector<8x32xf32> -> vector<8x32xf32>
    %86 = arith.addf %85, %4 : vector<8x32xf32>
    %cst_60 = arith.constant dense<0.000000e+00> : vector<8xf32>
    %87 = vector.multi_reduction <add>, %86, %cst_60 [1] : vector<8x32xf32> to vector<8xf32>
    %88 = vector.shape_cast %87 : vector<8xf32> to vector<8x1xf32>
    %cst_61 = arith.constant 3.200000e+01 : f32
    %89 = vector.broadcast %cst_61 : f32 to vector<8x1xf32>
    %90 = arith.divf %88, %89 : vector<8x1xf32>
    %91 = vector.broadcast %90 : vector<8x1xf32> to vector<8x32xf32>
    %92 = arith.subf %86, %91 : vector<8x32xf32>
    %93 = arith.mulf %92, %92 : vector<8x32xf32>
    %cst_62 = arith.constant dense<0.000000e+00> : vector<8xf32>
    %94 = vector.multi_reduction <add>, %93, %cst_62 [1] : vector<8x32xf32> to vector<8xf32>
    %95 = vector.shape_cast %94 : vector<8xf32> to vector<8x1xf32>
    %cst_63 = arith.constant 3.200000e+01 : f32
    %96 = vector.broadcast %cst_63 : f32 to vector<8x1xf32>
    %97 = arith.divf %95, %96 : vector<8x1xf32>
    %98 = vector.broadcast %90 : vector<8x1xf32> to vector<8x32xf32>
    %99 = arith.subf %86, %98 : vector<8x32xf32>
    %cst_64 = arith.constant 9.99999997E-7 : f32
    %100 = vector.broadcast %cst_64 : f32 to vector<8x1xf32>
    %101 = arith.addf %97, %100 : vector<8x1xf32>
    %102 = math.rsqrt %101 : vector<8x1xf32>
    %103 = vector.broadcast %102 : vector<8x1xf32> to vector<8x32xf32>
    %104 = arith.mulf %99, %103 : vector<8x32xf32>
    %c0_65 = arith.constant 0 : index
    %c0_66 = arith.constant 0 : index
    %105 = vector.load %arg7[%c0_65, %c0_66] : memref<1x32xf32, #tpu.memory_space<vmem>>, vector<1x32xf32>
    %106 = vector.broadcast %105 : vector<1x32xf32> to vector<8x32xf32>
    %107 = arith.mulf %104, %106 : vector<8x32xf32>
    %c0_67 = arith.constant 0 : index
    %c0_68 = arith.constant 0 : index
    %108 = vector.load %arg8[%c0_67, %c0_68] : memref<1x32xf32, #tpu.memory_space<vmem>>, vector<1x32xf32>
    %109 = vector.broadcast %108 : vector<1x32xf32> to vector<8x32xf32>
    %110 = arith.addf %107, %109 : vector<8x32xf32>
    %c0_69 = arith.constant 0 : index
    %c0_70 = arith.constant 0 : index
    %c0_71 = arith.constant 0 : index
    %111 = vector.load %arg9[%c0_69, %c0_70, %c0_71] : memref<1x8x32xf32, #tpu.memory_space<vmem>>, vector<1x8x32xf32>
    %112 = vector.shape_cast %111 : vector<1x8x32xf32> to vector<8x32xf32>
    %113 = vector.shape_cast %110 : vector<8x32xf32> to vector<1x8x32xf32>
    tpu.vector_store %arg9[%c0_69, %c0_70, %c0_71], %113 {strides = array<i32>} : memref<1x8x32xf32, #tpu.memory_space<vmem>>, vector<1x8x32xf32>,
    return
  }
  func.func @transform_0(%arg0: i32, %arg1: i32) -> (i32, i32, i32) {
    %c0_i32 = arith.constant 0 : i32
    %c0_i32_0 = arith.constant 0 : i32
    return %arg0, %arg1, %c0_i32 : i32, i32, i32
  }
  func.func @transform_1(%arg0: i32, %arg1: i32) -> (i32, i32, i32) {
    %c0_i32 = arith.constant 0 : i32
    %c0_i32_0 = arith.constant 0 : i32
    %c0_i32_1 = arith.constant 0 : i32
    return %arg0, %c0_i32, %c0_i32_0 : i32, i32, i32
  }
  func.func @transform_2(%arg0: i32, %arg1: i32) -> (i32, i32, i32) {
    %c0_i32 = arith.constant 0 : i32
    %c0_i32_0 = arith.constant 0 : i32
    %c0_i32_1 = arith.constant 0 : i32
    return %arg0, %c0_i32, %c0_i32_0 : i32, i32, i32
  }
  func.func @transform_3(%arg0: i32, %arg1: i32) -> (i32, i32) {
    %c0_i32 = arith.constant 0 : i32
    %c0_i32_0 = arith.constant 0 : i32
    %c0_i32_1 = arith.constant 0 : i32
    return %c0_i32, %c0_i32_0 : i32, i32
  }
  func.func @transform_4(%arg0: i32, %arg1: i32) -> (i32, i32) {
    %c0_i32 = arith.constant 0 : i32
    %c0_i32_0 = arith.constant 0 : i32
    %c0_i32_1 = arith.constant 0 : i32
    return %c0_i32, %c0_i32_0 : i32, i32
  }
  func.func @transform_5(%arg0: i32, %arg1: i32) -> (i32, i32) {
    %c0_i32 = arith.constant 0 : i32
    %c0_i32_0 = arith.constant 0 : i32
    %c0_i32_1 = arith.constant 0 : i32
    return %c0_i32, %c0_i32_0 : i32, i32
  }
  func.func @transform_6(%arg0: i32, %arg1: i32) -> (i32, i32) {
    %c0_i32 = arith.constant 0 : i32
    %c0_i32_0 = arith.constant 0 : i32
    %c0_i32_1 = arith.constant 0 : i32
    return %c0_i32, %c0_i32_0 : i32, i32
  }
  func.func @transform_7(%arg0: i32, %arg1: i32) -> (i32, i32, i32) {
    %c0_i32 = arith.constant 0 : i32
    %c0_i32_0 = arith.constant 0 : i32
    return %arg0, %arg1, %c0_i32 : i32, i32, i32
  }
  func.func @transform_8(%arg0: i32, %arg1: i32) -> (i32, i32, i32, i32) {
    %c0_i32 = arith.constant 0 : i32
    %c0_i32_0 = arith.constant 0 : i32
    %c0_i32_1 = arith.constant 0 : i32
    return %arg0, %c0_i32, %arg1, %c0_i32_0 : i32, i32, i32, i32
  }
}

module attributes {stable_mosaic.version = 11 : i64} {
  func.func @_mha_fused_kernel(%arg0: i32, %arg1: i32, %arg2: memref<1x8x32xf32, #tpu.memory_space<vmem>>, %arg3: memref<1x8x32xf32, #tpu.memory_space<vmem>>, %arg4: memref<1x8x32xf32, #tpu.memory_space<vmem>>, %arg5: memref<32x96xf32, #tpu.memory_space<vmem>>, %arg6: memref<32x32xf32, #tpu.memory_space<vmem>>, %arg7: memref<1x32xf32, #tpu.memory_space<vmem>>, %arg8: memref<1x32xf32, #tpu.memory_space<vmem>>, %arg9: memref<1x8x32xf32, #tpu.memory_space<vmem>>, %arg10: memref<1x4x8x8xf32, #tpu.memory_space<vmem>>, %arg11: memref<8x32xf32, #tpu.memory_space<vmem>>, %arg12: memref<8x32xf32, #tpu.memory_space<vmem>>, %arg13: memref<8x32xf32, #tpu.memory_space<vmem>>) attributes {dimension_semantics = [#tpu.dimension_semantics<parallel>, #tpu.dimension_semantics<arbitrary>], iteration_bounds = array<i64: 2, 1>, scalar_prefetch = 0 : i64, scratch_operands = 3 : i64, tpu.core_type = #tpu.core_type<tc>, window_params = [{transform_indices = @transform_0, window_bounds = array<i64: 1, 8, 32>}, {transform_indices = @transform_1, window_bounds = array<i64: 1, 8, 32>}, {transform_indices = @transform_2, window_bounds = array<i64: 1, 8, 32>}, {pipeline_mode = #tpu.pipeline_mode<synchronous>, transform_indices = @transform_3, window_bounds = array<i64: 32, 96>}, {pipeline_mode = #tpu.pipeline_mode<synchronous>, transform_indices = @transform_4, window_bounds = array<i64: 32, 32>}, {pipeline_mode = #tpu.pipeline_mode<synchronous>, transform_indices = @transform_5, window_bounds = array<i64: 1, 32>}, {pipeline_mode = #tpu.pipeline_mode<synchronous>, transform_indices = @transform_6, window_bounds = array<i64: 1, 32>}, {transform_indices = @transform_7, window_bounds = array<i64: 1, 8, 32>}, {transform_indices = @transform_8, window_bounds = array<i64: 1, 4, 8, 8>}]} {
    %c0_i32 = arith.constant 0 : i32
    %0 = arith.cmpi eq, %arg1, %c0_i32 : i32
    %1 = arith.extui %0 : i1 to i32
    %c0_i32_0 = arith.constant 0 : i32
    %2 = arith.cmpi ne, %1, %c0_i32_0 : i32
    scf.if %2 {
      %c0_72 = arith.constant 0 : index
      %c0_73 = arith.constant 0 : index
      %c0_74 = arith.constant 0 : index
      %114 = vector.load %arg3[%c0_72, %c0_73, %c0_74] : memref<1x8x32xf32, #tpu.memory_space<vmem>>, vector<1x8x32xf32>
      %115 = vector.shape_cast %114 : vector<1x8x32xf32> to vector<8x32xf32>
      %c0_75 = arith.constant 0 : index
      %c0_76 = arith.constant 0 : index
      %c0_77 = arith.constant 0 : index
      %116 = vector.load %arg4[%c0_75, %c0_76, %c0_77] : memref<1x8x32xf32, #tpu.memory_space<vmem>>, vector<1x8x32xf32>
      %117 = vector.shape_cast %116 : vector<1x8x32xf32> to vector<8x32xf32>
      %c0_78 = arith.constant 0 : index
      %c32 = arith.constant 32 : index
      %118 = vector.load %arg5[%c0_78, %c32] : memref<32x96xf32, #tpu.memory_space<vmem>>, vector<32x32xf32>
      %cst_79 = arith.constant dense<0.000000e+00> : vector<8x32xf32>
      %119 = tpu.matmul %115, %118, %cst_79 {dimension_numbers = #tpu.dot_dimension_numbers<[1], [0], [0], [1], [0, 0, 1, 1], [], []>} : vector<8x32xf32>, vector<32x32xf32>, vector<8x32xf32> -> vector<8x32xf32>
      %c0_80 = arith.constant 0 : index
      %c0_81 = arith.constant 0 : index
      %120 = vector.load %arg11[%c0_80, %c0_81] : memref<8x32xf32, #tpu.memory_space<vmem>>, vector<8x32xf32>
      tpu.vector_store %arg11[%c0_80, %c0_81], %119 {strides = array<i32>} : memref<8x32xf32, #tpu.memory_space<vmem>>, vector<8x32xf32>,
      %c0_82 = arith.constant 0 : index
      %c64 = arith.constant 64 : index
      %121 = vector.load %arg5[%c0_82, %c64] : memref<32x96xf32, #tpu.memory_space<vmem>>, vector<32x32xf32>
      %cst_83 = arith.constant dense<0.000000e+00> : vector<8x32xf32>
      %122 = tpu.matmul %117, %121, %cst_83 {dimension_numbers = #tpu.dot_dimension_numbers<[1], [0], [0], [1], [0, 0, 1, 1], [], []>} : vector<8x32xf32>, vector<32x32xf32>, vector<8x32xf32> -> vector<8x32xf32>
      %c0_84 = arith.constant 0 : index
      %c0_85 = arith.constant 0 : index
      %123 = vector.load %arg12[%c0_84, %c0_85] : memref<8x32xf32, #tpu.memory_space<vmem>>, vector<8x32xf32>
      tpu.vector_store %arg12[%c0_84, %c0_85], %122 {strides = array<i32>} : memref<8x32xf32, #tpu.memory_space<vmem>>, vector<8x32xf32>,
    } else {
    }
    %c0 = arith.constant 0 : index
    %c0_1 = arith.constant 0 : index
    %c0_2 = arith.constant 0 : index
    %3 = vector.load %arg2[%c0, %c0_1, %c0_2] : memref<1x8x32xf32, #tpu.memory_space<vmem>>, vector<1x8x32xf32>
    %4 = vector.shape_cast %3 : vector<1x8x32xf32> to vector<8x32xf32>
    %c0_3 = arith.constant 0 : index
    %c0_4 = arith.constant 0 : index
    %5 = vector.load %arg5[%c0_3, %c0_4] : memref<32x96xf32, #tpu.memory_space<vmem>>, vector<32x32xf32>
    %cst = arith.constant dense<0.000000e+00> : vector<8x32xf32>
    %6 = tpu.matmul %4, %5, %cst {dimension_numbers = #tpu.dot_dimension_numbers<[1], [0], [0], [1], [0, 0, 1, 1], [], []>} : vector<8x32xf32>, vector<32x32xf32>, vector<8x32xf32> -> vector<8x32xf32>
    %7 = vector.extract_strided_slice %6 {offsets = [0, 0], sizes = [8, 8], strides = [1, 1]} : vector<8x32xf32> to vector<8x8xf32>
    %c0_5 = arith.constant 0 : index
    %c0_6 = arith.constant 0 : index
    %8 = vector.load %arg11[%c0_5, %c0_6] : memref<8x32xf32, #tpu.memory_space<vmem>>, vector<8x8xf32>
    %c0_7 = arith.constant 0 : index
    %c0_8 = arith.constant 0 : index
    %9 = vector.load %arg12[%c0_7, %c0_8] : memref<8x32xf32, #tpu.memory_space<vmem>>, vector<8x8xf32>
    %cst_9 = arith.constant dense<0.000000e+00> : vector<8x8xf32>
    %10 = tpu.matmul %7, %8, %cst_9 {dimension_numbers = #tpu.dot_dimension_numbers<[1], [1], [0], [0], [0, 0, 1, 0], [], []>} : vector<8x8xf32>, vector<8x8xf32>, vector<8x8xf32> -> vector<8x8xf32>
    %cst_10 = arith.constant dense<0xFF800000> : vector<8xf32>
    %11 = vector.multi_reduction <maximumf>, %10, %cst_10 [1] : vector<8x8xf32> to vector<8xf32>
    %12 = vector.shape_cast %11 : vector<8xf32> to vector<8x1xf32>
    %13 = vector.broadcast %12 : vector<8x1xf32> to vector<8x8xf32>
    %14 = arith.subf %10, %13 : vector<8x8xf32>
    %15 = math.exp %14 : vector<8x8xf32>
    %cst_11 = arith.constant dense<0.000000e+00> : vector<8xf32>
    %16 = vector.multi_reduction <add>, %15, %cst_11 [1] : vector<8x8xf32> to vector<8xf32>
    %17 = vector.shape_cast %16 : vector<8xf32> to vector<8x1xf32>
    %18 = tpu.reciprocal %17 : vector<8x1xf32> -> vector<8x1xf32>
    %19 = vector.broadcast %18 : vector<8x1xf32> to vector<8x8xf32>
    %20 = arith.mulf %15, %19 : vector<8x8xf32>
    %cst_12 = arith.constant dense<0.000000e+00> : vector<8x8xf32>
    %21 = tpu.matmul %20, %9, %cst_12 {dimension_numbers = #tpu.dot_dimension_numbers<[1], [0], [0], [1], [0, 0, 1, 1], [], []>} : vector<8x8xf32>, vector<8x8xf32>, vector<8x8xf32> -> vector<8x8xf32>
    %c0_13 = arith.constant 0 : index
    %c0_14 = arith.constant 0 : index
    %22 = vector.load %arg13[%c0_13, %c0_14] : memref<8x32xf32, #tpu.memory_space<vmem>>, vector<8x8xf32>
    tpu.vector_store %arg13[%c0_13, %c0_14], %21 {strides = array<i32>} : memref<8x32xf32, #tpu.memory_space<vmem>>, vector<8x8xf32>,
    %c0_15 = arith.constant 0 : index
    %c0_16 = arith.constant 0 : index
    %c0_17 = arith.constant 0 : index
    %c0_18 = arith.constant 0 : index
    %23 = vector.load %arg10[%c0_15, %c0_16, %c0_17, %c0_18] : memref<1x4x8x8xf32, #tpu.memory_space<vmem>>, vector<1x1x8x8xf32>
    %24 = vector.shape_cast %23 : vector<1x1x8x8xf32> to vector<8x8xf32>
    %25 = vector.shape_cast %20 : vector<8x8xf32> to vector<1x1x8x8xf32>
    tpu.vector_store %arg10[%c0_15, %c0_16, %c0_17, %c0_18], %25 {strides = array<i32>} : memref<1x4x8x8xf32, #tpu.memory_space<vmem>>, vector<1x1x8x8xf32>,
    %26 = vector.extract_strided_slice %6 {offsets = [0, 8], sizes = [8, 8], strides = [1, 1]} : vector<8x32xf32> to vector<8x8xf32>
    %c0_19 = arith.constant 0 : index
    %c8 = arith.constant 8 : index
    %27 = vector.load %arg11[%c0_19, %c8] : memref<8x32xf32, #tpu.memory_space<vmem>>, vector<8x8xf32>
    %c0_20 = arith.constant 0 : index
    %c8_21 = arith.constant 8 : index
    %28 = vector.load %arg12[%c0_20, %c8_21] : memref<8x32xf32, #tpu.memory_space<vmem>>, vector<8x8xf32>
    %cst_22 = arith.constant dense<0.000000e+00> : vector<8x8xf32>
    %29 = tpu.matmul %26, %27, %cst_22 {dimension_numbers = #tpu.dot_dimension_numbers<[1], [1], [0], [0], [0, 0, 1, 0], [], []>} : vector<8x8xf32>, vector<8x8xf32>, vector<8x8xf32> -> vector<8x8xf32>
    %cst_23 = arith.constant dense<0xFF800000> : vector<8xf32>
    %30 = vector.multi_reduction <maximumf>, %29, %cst_23 [1] : vector<8x8xf32> to vector<8xf32>
    %31 = vector.shape_cast %30 : vector<8xf32> to vector<8x1xf32>
    %32 = vector.broadcast %31 : vector<8x1xf32> to vector<8x8xf32>
    %33 = arith.subf %29, %32 : vector<8x8xf32>
    %34 = math.exp %33 : vector<8x8xf32>
    %cst_24 = arith.constant dense<0.000000e+00> : vector<8xf32>
    %35 = vector.multi_reduction <add>, %34, %cst_24 [1] : vector<8x8xf32> to vector<8xf32>
    %36 = vector.shape_cast %35 : vector<8xf32> to vector<8x1xf32>
    %37 = tpu.reciprocal %36 : vector<8x1xf32> -> vector<8x1xf32>
    %38 = vector.broadcast %37 : vector<8x1xf32> to vector<8x8xf32>
    %39 = arith.mulf %34, %38 : vector<8x8xf32>
    %cst_25 = arith.constant dense<0.000000e+00> : vector<8x8xf32>
    %40 = tpu.matmul %39, %28, %cst_25 {dimension_numbers = #tpu.dot_dimension_numbers<[1], [0], [0], [1], [0, 0, 1, 1], [], []>} : vector<8x8xf32>, vector<8x8xf32>, vector<8x8xf32> -> vector<8x8xf32>
    %c0_26 = arith.constant 0 : index
    %c8_27 = arith.constant 8 : index
    %41 = vector.load %arg13[%c0_26, %c8_27] : memref<8x32xf32, #tpu.memory_space<vmem>>, vector<8x8xf32>
    tpu.vector_store %arg13[%c0_26, %c8_27], %40 {strides = array<i32>} : memref<8x32xf32, #tpu.memory_space<vmem>>, vector<8x8xf32>,
    %c0_28 = arith.constant 0 : index
    %c1 = arith.constant 1 : index
    %c0_29 = arith.constant 0 : index
    %c0_30 = arith.constant 0 : index
    %42 = vector.load %arg10[%c0_28, %c1, %c0_29, %c0_30] : memref<1x4x8x8xf32, #tpu.memory_space<vmem>>, vector<1x1x8x8xf32>
    %43 = vector.shape_cast %42 : vector<1x1x8x8xf32> to vector<8x8xf32>
    %44 = vector.shape_cast %39 : vector<8x8xf32> to vector<1x1x8x8xf32>
    tpu.vector_store %arg10[%c0_28, %c1, %c0_29, %c0_30], %44 {strides = array<i32>} : memref<1x4x8x8xf32, #tpu.memory_space<vmem>>, vector<1x1x8x8xf32>,
    %45 = vector.extract_strided_slice %6 {offsets = [0, 16], sizes = [8, 8], strides = [1, 1]} : vector<8x32xf32> to vector<8x8xf32>
    %c0_31 = arith.constant 0 : index
    %c16 = arith.constant 16 : index
    %46 = vector.load %arg11[%c0_31, %c16] : memref<8x32xf32, #tpu.memory_space<vmem>>, vector<8x8xf32>
    %c0_32 = arith.constant 0 : index
    %c16_33 = arith.constant 16 : index
    %47 = vector.load %arg12[%c0_32, %c16_33] : memref<8x32xf32, #tpu.memory_space<vmem>>, vector<8x8xf32>
    %cst_34 = arith.constant dense<0.000000e+00> : vector<8x8xf32>
    %48 = tpu.matmul %45, %46, %cst_34 {dimension_numbers = #tpu.dot_dimension_numbers<[1], [1], [0], [0], [0, 0, 1, 0], [], []>} : vector<8x8xf32>, vector<8x8xf32>, vector<8x8xf32> -> vector<8x8xf32>
    %cst_35 = arith.constant dense<0xFF800000> : vector<8xf32>
    %49 = vector.multi_reduction <maximumf>, %48, %cst_35 [1] : vector<8x8xf32> to vector<8xf32>
    %50 = vector.shape_cast %49 : vector<8xf32> to vector<8x1xf32>
    %51 = vector.broadcast %50 : vector<8x1xf32> to vector<8x8xf32>
    %52 = arith.subf %48, %51 : vector<8x8xf32>
    %53 = math.exp %52 : vector<8x8xf32>
    %cst_36 = arith.constant dense<0.000000e+00> : vector<8xf32>
    %54 = vector.multi_reduction <add>, %53, %cst_36 [1] : vector<8x8xf32> to vector<8xf32>
    %55 = vector.shape_cast %54 : vector<8xf32> to vector<8x1xf32>
    %56 = tpu.reciprocal %55 : vector<8x1xf32> -> vector<8x1xf32>
    %57 = vector.broadcast %56 : vector<8x1xf32> to vector<8x8xf32>
    %58 = arith.mulf %53, %57 : vector<8x8xf32>
    %cst_37 = arith.constant dense<0.000000e+00> : vector<8x8xf32>
    %59 = tpu.matmul %58, %47, %cst_37 {dimension_numbers = #tpu.dot_dimension_numbers<[1], [0], [0], [1], [0, 0, 1, 1], [], []>} : vector<8x8xf32>, vector<8x8xf32>, vector<8x8xf32> -> vector<8x8xf32>
    %c0_38 = arith.constant 0 : index
    %c16_39 = arith.constant 16 : index
    %60 = vector.load %arg13[%c0_38, %c16_39] : memref<8x32xf32, #tpu.memory_space<vmem>>, vector<8x8xf32>
    tpu.vector_store %arg13[%c0_38, %c16_39], %59 {strides = array<i32>} : memref<8x32xf32, #tpu.memory_space<vmem>>, vector<8x8xf32>,
    %c0_40 = arith.constant 0 : index
    %c2 = arith.constant 2 : index
    %c0_41 = arith.constant 0 : index
    %c0_42 = arith.constant 0 : index
    %61 = vector.load %arg10[%c0_40, %c2, %c0_41, %c0_42] : memref<1x4x8x8xf32, #tpu.memory_space<vmem>>, vector<1x1x8x8xf32>
    %62 = vector.shape_cast %61 : vector<1x1x8x8xf32> to vector<8x8xf32>
    %63 = vector.shape_cast %58 : vector<8x8xf32> to vector<1x1x8x8xf32>
    tpu.vector_store %arg10[%c0_40, %c2, %c0_41, %c0_42], %63 {strides = array<i32>} : memref<1x4x8x8xf32, #tpu.memory_space<vmem>>, vector<1x1x8x8xf32>,
    %64 = vector.extract_strided_slice %6 {offsets = [0, 24], sizes = [8, 8], strides = [1, 1]} : vector<8x32xf32> to vector<8x8xf32>
    %c0_43 = arith.constant 0 : index
    %c24 = arith.constant 24 : index
    %65 = vector.load %arg11[%c0_43, %c24] : memref<8x32xf32, #tpu.memory_space<vmem>>, vector<8x8xf32>
    %c0_44 = arith.constant 0 : index
    %c24_45 = arith.constant 24 : index
    %66 = vector.load %arg12[%c0_44, %c24_45] : memref<8x32xf32, #tpu.memory_space<vmem>>, vector<8x8xf32>
    %cst_46 = arith.constant dense<0.000000e+00> : vector<8x8xf32>
    %67 = tpu.matmul %64, %65, %cst_46 {dimension_numbers = #tpu.dot_dimension_numbers<[1], [1], [0], [0], [0, 0, 1, 0], [], []>} : vector<8x8xf32>, vector<8x8xf32>, vector<8x8xf32> -> vector<8x8xf32>
    %cst_47 = arith.constant dense<0xFF800000> : vector<8xf32>
    %68 = vector.multi_reduction <maximumf>, %67, %cst_47 [1] : vector<8x8xf32> to vector<8xf32>
    %69 = vector.shape_cast %68 : vector<8xf32> to vector<8x1xf32>
    %70 = vector.broadcast %69 : vector<8x1xf32> to vector<8x8xf32>
    %71 = arith.subf %67, %70 : vector<8x8xf32>
    %72 = math.exp %71 : vector<8x8xf32>
    %cst_48 = arith.constant dense<0.000000e+00> : vector<8xf32>
    %73 = vector.multi_reduction <add>, %72, %cst_48 [1] : vector<8x8xf32> to vector<8xf32>
    %74 = vector.shape_cast %73 : vector<8xf32> to vector<8x1xf32>
    %75 = tpu.reciprocal %74 : vector<8x1xf32> -> vector<8x1xf32>
    %76 = vector.broadcast %75 : vector<8x1xf32> to vector<8x8xf32>
    %77 = arith.mulf %72, %76 : vector<8x8xf32>
    %cst_49 = arith.constant dense<0.000000e+00> : vector<8x8xf32>
    %78 = tpu.matmul %77, %66, %cst_49 {dimension_numbers = #tpu.dot_dimension_numbers<[1], [0], [0], [1], [0, 0, 1, 1], [], []>} : vector<8x8xf32>, vector<8x8xf32>, vector<8x8xf32> -> vector<8x8xf32>
    %c0_50 = arith.constant 0 : index
    %c24_51 = arith.constant 24 : index
    %79 = vector.load %arg13[%c0_50, %c24_51] : memref<8x32xf32, #tpu.memory_space<vmem>>, vector<8x8xf32>
    tpu.vector_store %arg13[%c0_50, %c24_51], %78 {strides = array<i32>} : memref<8x32xf32, #tpu.memory_space<vmem>>, vector<8x8xf32>,
    %c0_52 = arith.constant 0 : index
    %c3 = arith.constant 3 : index
    %c0_53 = arith.constant 0 : index
    %c0_54 = arith.constant 0 : index
    %80 = vector.load %arg10[%c0_52, %c3, %c0_53, %c0_54] : memref<1x4x8x8xf32, #tpu.memory_space<vmem>>, vector<1x1x8x8xf32>
    %81 = vector.shape_cast %80 : vector<1x1x8x8xf32> to vector<8x8xf32>
    %82 = vector.shape_cast %77 : vector<8x8xf32> to vector<1x1x8x8xf32>
    tpu.vector_store %arg10[%c0_52, %c3, %c0_53, %c0_54], %82 {strides = array<i32>} : memref<1x4x8x8xf32, #tpu.memory_space<vmem>>, vector<1x1x8x8xf32>,
    %c0_55 = arith.constant 0 : index
    %c0_56 = arith.constant 0 : index
    %83 = vector.load %arg13[%c0_55, %c0_56] : memref<8x32xf32, #tpu.memory_space<vmem>>, vector<8x32xf32>
    %c0_57 = arith.constant 0 : index
    %c0_58 = arith.constant 0 : index
    %84 = vector.load %arg6[%c0_57, %c0_58] : memref<32x32xf32, #tpu.memory_space<vmem>>, vector<32x32xf32>
    %cst_59 = arith.constant dense<0.000000e+00> : vector<8x32xf32>
    %85 = tpu.matmul %83, %84, %cst_59 {dimension_numbers = #tpu.dot_dimension_numbers<[1], [0], [0], [1], [0, 0, 1, 1], [], []>} : vector<8x32xf32>, vector<32x32xf32>, vector<8x32xf32> -> vector<8x32xf32>
    %86 = arith.addf %85, %4 : vector<8x32xf32>
    %cst_60 = arith.constant dense<0.000000e+00> : vector<8xf32>
    %87 = vector.multi_reduction <add>, %86, %cst_60 [1] : vector<8x32xf32> to vector<8xf32>
    %88 = vector.shape_cast %87 : vector<8xf32> to vector<8x1xf32>
    %cst_61 = arith.constant 3.200000e+01 : f32
    %89 = vector.broadcast %cst_61 : f32 to vector<8x1xf32>
    %90 = arith.divf %88, %89 : vector<8x1xf32>
    %91 = vector.broadcast %90 : vector<8x1xf32> to vector<8x32xf32>
    %92 = arith.subf %86, %91 : vector<8x32xf32>
    %93 = arith.mulf %92, %92 : vector<8x32xf32>
    %cst_62 = arith.constant dense<0.000000e+00> : vector<8xf32>
    %94 = vector.multi_reduction <add>, %93, %cst_62 [1] : vector<8x32xf32> to vector<8xf32>
    %95 = vector.shape_cast %94 : vector<8xf32> to vector<8x1xf32>
    %cst_63 = arith.constant 3.200000e+01 : f32
    %96 = vector.broadcast %cst_63 : f32 to vector<8x1xf32>
    %97 = arith.divf %95, %96 : vector<8x1xf32>
    %98 = vector.broadcast %90 : vector<8x1xf32> to vector<8x32xf32>
    %99 = arith.subf %86, %98 : vector<8x32xf32>
    %cst_64 = arith.constant 9.99999997E-7 : f32
    %100 = vector.broadcast %cst_64 : f32 to vector<8x1xf32>
    %101 = arith.addf %97, %100 : vector<8x1xf32>
    %102 = math.rsqrt %101 : vector<8x1xf32>
    %103 = vector.broadcast %102 : vector<8x1xf32> to vector<8x32xf32>
    %104 = arith.mulf %99, %103 : vector<8x32xf32>
    %c0_65 = arith.constant 0 : index
    %c0_66 = arith.constant 0 : index
    %105 = vector.load %arg7[%c0_65, %c0_66] : memref<1x32xf32, #tpu.memory_space<vmem>>, vector<1x32xf32>
    %106 = vector.broadcast %105 : vector<1x32xf32> to vector<8x32xf32>
    %107 = arith.mulf %104, %106 : vector<8x32xf32>
    %c0_67 = arith.constant 0 : index
    %c0_68 = arith.constant 0 : index
    %108 = vector.load %arg8[%c0_67, %c0_68] : memref<1x32xf32, #tpu.memory_space<vmem>>, vector<1x32xf32>
    %109 = vector.broadcast %108 : vector<1x32xf32> to vector<8x32xf32>
    %110 = arith.addf %107, %109 : vector<8x32xf32>
    %c0_69 = arith.constant 0 : index
    %c0_70 = arith.constant 0 : index
    %c0_71 = arith.constant 0 : index
    %111 = vector.load %arg9[%c0_69, %c0_70, %c0_71] : memref<1x8x32xf32, #tpu.memory_space<vmem>>, vector<1x8x32xf32>
    %112 = vector.shape_cast %111 : vector<1x8x32xf32> to vector<8x32xf32>
    %113 = vector.shape_cast %110 : vector<8x32xf32> to vector<1x8x32xf32>
    tpu.vector_store %arg9[%c0_69, %c0_70, %c0_71], %113 {strides = array<i32>} : memref<1x8x32xf32, #tpu.memory_space<vmem>>, vector<1x8x32xf32>,
    return
  }
  func.func @transform_0(%arg0: i32, %arg1: i32) -> (i32, i32, i32) {
    %c0_i32 = arith.constant 0 : i32
    %c0_i32_0 = arith.constant 0 : i32
    return %arg0, %arg1, %c0_i32 : i32, i32, i32
  }
  func.func @transform_1(%arg0: i32, %arg1: i32) -> (i32, i32, i32) {
    %c0_i32 = arith.constant 0 : i32
    %c0_i32_0 = arith.constant 0 : i32
    %c0_i32_1 = arith.constant 0 : i32
    return %arg0, %c0_i32, %c0_i32_0 : i32, i32, i32
  }
  func.func @transform_2(%arg0: i32, %arg1: i32) -> (i32, i32, i32) {
    %c0_i32 = arith.constant 0 : i32
    %c0_i32_0 = arith.constant 0 : i32
    %c0_i32_1 = arith.constant 0 : i32
    return %arg0, %c0_i32, %c0_i32_0 : i32, i32, i32
  }
  func.func @transform_3(%arg0: i32, %arg1: i32) -> (i32, i32) {
    %c0_i32 = arith.constant 0 : i32
    %c0_i32_0 = arith.constant 0 : i32
    %c0_i32_1 = arith.constant 0 : i32
    return %c0_i32, %c0_i32_0 : i32, i32
  }
  func.func @transform_4(%arg0: i32, %arg1: i32) -> (i32, i32) {
    %c0_i32 = arith.constant 0 : i32
    %c0_i32_0 = arith.constant 0 : i32
    %c0_i32_1 = arith.constant 0 : i32
    return %c0_i32, %c0_i32_0 : i32, i32
  }
  func.func @transform_5(%arg0: i32, %arg1: i32) -> (i32, i32) {
    %c0_i32 = arith.constant 0 : i32
    %c0_i32_0 = arith.constant 0 : i32
    %c0_i32_1 = arith.constant 0 : i32
    return %c0_i32, %c0_i32_0 : i32, i32
  }
  func.func @transform_6(%arg0: i32, %arg1: i32) -> (i32, i32) {
    %c0_i32 = arith.constant 0 : i32
    %c0_i32_0 = arith.constant 0 : i32
    %c0_i32_1 = arith.constant 0 : i32
    return %c0_i32, %c0_i32_0 : i32, i32
  }
  func.func @transform_7(%arg0: i32, %arg1: i32) -> (i32, i32, i32) {
    %c0_i32 = arith.constant 0 : i32
    %c0_i32_0 = arith.constant 0 : i32
    return %arg0, %arg1, %c0_i32 : i32, i32, i32
  }
  func.func @transform_8(%arg0: i32, %arg1: i32) -> (i32, i32, i32, i32) {
    %c0_i32 = arith.constant 0 : i32
    %c0_i32_0 = arith.constant 0 : i32
    %c0_i32_1 = arith.constant 0 : i32
    return %arg0, %c0_i32, %arg1, %c0_i32_0 : i32, i32, i32, i32
  }
}

</mosaic_0001>

<bundles_post_ra>
// kernel: tpu_custom_call.1
= control target key start
LH: loop header
LB: loop body
LE: loop exit
PB: predicated region body
PF: predicated region fallthrough
CT: control target
= control target key end

     0   :  { %s2005_s0 = inlined_call_operand.hbm [shape: f32[2,8,32], index: 0, kind: input, shape index: {}]   ;;  %s2006_s1 = inlined_call_operand.hbm [shape: f32[2,8,32], index: 1, kind: input, shape index: {}]   ;;  %s2007_s2 = inlined_call_operand.hbm [shape: f32[2,8,32], index: 2, kind: input, shape index: {}]   ;;  %s2008_s3 = inlined_call_operand.hbm [shape: f32[32,96], index: 3, kind: input, shape index: {}]   ;;  %s2009_s4 = inlined_call_operand.hbm [shape: f32[32,32], index: 4, kind: input, shape index: {}]   ;;  %s2010_s5 = inlined_call_operand.vmem [shape: f32[1,32], index: 5, kind: input, shape index: {}]   ;;  %s2011_s6 = inlined_call_operand.vmem [shape: f32[1,32], index: 6, kind: input, shape index: {}]   ;;  %s2012_s7 = inlined_call_operand.hbm [shape: f32[2,8,32], index: 7, kind: output, shape index: {0}]   ;;  %s2013_s8 = inlined_call_operand.hbm [shape: f32[2,4,8,8], index: 8, kind: output, shape index: {1}]  }
   0x1   :  { %2017 = sst [smem:[#allocation24_spill]] %s2006_s1 }
   0x2   :  { %2018 = sst [smem:[#allocation25_spill]] %s2008_s3 }
   0x3   :  { %2019 = sst [smem:[#allocation26_spill]] %s2011_s6 }
   0x4   :  { %2020 = sst [smem:[#allocation27_spill]] %s2012_s7 }
   0x5   :  { %14 = vsyncpa [#allocation6], 0 }
   0x6   :  { %16 = vsyncpa [#allocation6 + $0x1], 0 }
   0x7   :  { %17 = vsyncpa [#allocation9], 0 }
   0x8   :  { %18 = vsyncpa [#allocation12], 0 }
   0x9   :  { %19 = vsyncpa [#allocation7], 0 }
   0xa   :  { %21 = vsyncpa [#allocation7 + $0x1], 0 }
   0xb   :  { %22 = vsyncpa [#allocation16], 0 }
   0xc   :  { %24 = vsyncpa [#allocation16 + $0x1], 0  ;;  %s1698_s27 = smov 0   ;;  %s1700_s28 = smov 0  }
   0xd   :  { %s1702_s29 = smov 0   ;;  %s1704_s30 = smov 0  }
   0xe   :  { %s1706_s9 = smov 0   ;;  %s1708_s10 = smov 0  }
   0xf LB: > { %2021 = sst [smem:[#allocation22_spill]] %s1615_s27  ;;  %s1166_s11 = sadd.s32 4294967295, %s1635_s10   ;;  %s1635_s10 = sphi %s1708_s10, %s30_s10   ;;  %s1631_s9 = sphi %s1706_s9, %s2044_s9   ;;  %s1627_s30 = sphi %s1704_s30, %s2043_s30   ;;  %s1623_s29 = sphi %s1702_s29, %s2042_s29   ;;  %s1619_s28 = sphi %s1700_s28, %s2041_s28   ;;  %s1615_s27 = sphi %s1698_s27, %s2040_s27  }
  0x10   : > { %s1167_s12 = sadd.s32 4294967294, %s1635_s10   ;;  %p64_p0 = scmp.ne.s32.totalorder %s1619_s28, %s1615_s27 }
  0x11   : > { %p1732_p1 = scmp.eq.s32.totalorder %s1166_s11, 0  ;;  %p1736_p2 = scmp.eq.s32.totalorder %s1166_s11, 1 }
  0x12   : > { %p232_p3 = scmp.eq.s32.totalorder %s1167_s12, 1  ;;  %p1168_p5 = scmp.ge.s32.totalorder %s1635_s10, 1 }
  0x13   : > { %p1742_p4 = por %p1732_p1, %p64_p0  ;;  %p267_p7 = scmp.lt.s32.totalorder %s1635_s10, 3 }
  0x14   : > { %p1747_p6 = por %p232_p3, %p64_p0  ;;  %s1753_s17 = sshll.u32 %s1627_s30, 3 }
  0x15   : > { %p1755_p8 = pnand %p1168_p5, %p267_p7  ;;  %s2028_s1 = sld [smem:[#allocation24_spill]] }
  0x16   : > { %s2025_s16 = scalar_select %p1747_p6, 1, 0 }
  0x17   : > { %s1637_s23 = smov [#allocation8]   ;;  %p1227_p9 = pneg %p1755_p8 }
  0x18   : > { %2026 = sst [smem:[#allocation23_spill]] %s2025_s16  ;;  %s283_s24 = sshll.u32 %s1637_s23, 4  ;;  %s284_s24 = int_to_ptr.vmem [resolvable:$true] %s283_s24 }
  0x19   : > { %p1767_p10 = pnand %p1227_p9, %p1742_p4  ;;  %p1773_p11 = pnand %p1227_p9, %p1732_p1 }
  0x1a   : > { %s2031_s3 = sld [smem:[#allocation25_spill]] }
  0x1b   : > { %s279_s21 = scalar_lea.hbm %s2028_s1, %s1753_s17  ;;  %p1367_p0 = pneg %p1767_p10 }
  0x1c   : > { %s281_s22 = sshll.u32 %s279_s21, 4  ;;  %s1370_s27 = scalar_lea.hbm %s2028_s1, 16  ;;  %s282_s22 = int_to_ptr.hbm [resolvable:$true] %s281_s22 }
  0x1d   : > { %s1363_s20 = sshra.s32 %s282_s22, 4  ;;  %s1364_s20 = int_to_ptr.hbm [resolvable:$true] %s1363_s20 }
  0x1e   : > { %s1365_s21 = scalar_lea.hbm %s1364_s20, 8  ;;  %p1371_p7 = scmp.lt.s32.totalorder %s1364_s20, %s2028_s1 }
  0x1f   : > { %p1366_p13 = scmp.ne.s32.totalorder %s1364_s20, %s1365_s21  ;;  %p1372_p9 = scmp.lt.s32.totalorder %s1370_s27, %s1365_s21 }
  0x20   : > { %s306_s19 = sshll.u32 %s2031_s3, 4  ;;  %s307_s19 = int_to_ptr.hbm [resolvable:$true] %s306_s19 }
  0x21   : > { %p1368_p3 = pnand %p1367_p0, %p1366_p13  ;;  %p1373_p12 = por %p1372_p9, %p1371_p7 }
  0x23   : > { %p1369_p5 = pneg %p1368_p3 }
  0x25   : > { %p1374_p6 = pnand %p1373_p12, %p1369_p5 }
  0x27   : > { %1377 = shalt.err (!%p1374_p6)
}
  0x28   : > { %1230 = dma.hbm_to_vmem [thread:$0]  (!%p1767_p10), %s282_s22, 128, %s284_s24, [#allocation9]  }
  0x29   : > { %s1638_s11 = smov [#allocation11]   ;;  %s1639_s16 = smov 128  }
  0x2a   : > { %s308_s12 = sshll.u32 %s1638_s11, 4  ;;  %s1640_s23 = smov 8   ;;  %s309_s12 = int_to_ptr.vmem [resolvable:$true] %s308_s12 }
  0x2b   : > { %1236 = dma.hbm_to_vmem [thread:$0]  (!%p1773_p11), %s307_s19, 512, %s309_s12, [#allocation12], %s1639_s16, %s1639_s16, %s1640_s23  }
  0x2c   : > { %s293_s27 = scalar_lea.hbm %s2007_s2, %s1753_s17  ;;  %s1641_s21 = smov [#allocation10]  }
  0x2d   : > { %s295_s20 = sshll.u32 %s293_s27, 4  ;;  %s297_s1 = sshll.u32 %s1641_s21, 4  ;;  %s296_s20 = int_to_ptr.hbm [resolvable:$true] %s295_s20  ;;  %s298_s1 = int_to_ptr.vmem [resolvable:$true] %s297_s1 }
  0x2e   : > { %s1423_s22 = sshra.s32 %s296_s20, 4  ;;  %s1430_s19 = scalar_lea.hbm %s2007_s2, 16  ;;  %s1424_s22 = int_to_ptr.hbm [resolvable:$true] %s1423_s22 }
  0x2f   : > { %s1425_s24 = scalar_lea.hbm %s1424_s22, 8  ;;  %p1431_p3 = scmp.lt.s32.totalorder %s1424_s22, %s2007_s2 }
  0x30   : > { %p1426_p6 = scmp.ne.s32.totalorder %s1424_s22, %s1425_s24  ;;  %p1432_p5 = scmp.lt.s32.totalorder %s1430_s19, %s1425_s24 }
  0x32   : > { %p1428_p12 = pnand %p1426_p6, %p1367_p0  ;;  %p1433_p7 = por %p1432_p5, %p1431_p3 }
  0x34   : > { %p1429_p13 = pneg %p1428_p12 }
  0x36   : > { %p1434_p9 = pnand %p1433_p7, %p1429_p13 }
  0x38   : > { %1437 = shalt.err (!%p1434_p9)
}
  0x39   : > { %1233 = dma.hbm_to_vmem [thread:$0]  (!%p1767_p10), %s296_s20, 128, %s298_s1, [#allocation9]  }
  0x3a   : > { %s320_s27 = sshll.u32 %s2009_s4, 4  ;;  %s1642_s21 = smov [#allocation13]   ;;  %s321_s27 = int_to_ptr.hbm [resolvable:$true] %s320_s27 }
  0x3b   : > { %s322_s22 = sshll.u32 %s1642_s21, 4  ;;  %s51_s25 = sadd.s32 1, %s1623_s29  ;;  %s323_s22 = int_to_ptr.vmem [resolvable:$true] %s322_s22 }
  0x3c   : > { %1239 = dma.hbm_to_vmem [thread:$0]  (!%p1773_p11), %s321_s27, 512, %s323_s22, [#allocation12], %s1639_s16, %s1639_s16, %s1640_s23  }
  0x3d   : > { %s42_s24 = sadd.s32 1, %s1631_s9  ;;  %p58_p10 = scmp.ne.s32.totalorder %s1623_s29, %s1619_s28 }
  0x3e   : > { %p44_p0 = scmp.ge.s32.totalorder %s42_s24, 2  ;;  %p59_p6 = scmp.eq.s32.totalorder %s1635_s10, 0 }
  0x3f   : > { %p1829_p12 = por %p1736_p2, %p58_p10  ;;  %p1253_p13 = scmp.lt.s32.totalorder %s1635_s10, 2 }
  0x40   : > { %s2046_s24 = smov (%p44_p0, %s42_s24), 0  ;;  %p1836_p3 = por %p59_p6, %p58_p10 }
  0x41   : > { %s342_s16 = sand.u32 1, %s1623_s29   ;;  %s46_s23 = ssub.s32 %s1631_s9, %s2046_s24 }
  0x42   : > { %p49_p11 = scmp.eq.s32.totalorder %s46_s23, 0  ;;  %s1174_s20 = sshll.u32 %s342_s16, 3 }
  0x43   : > { %s1175_s11 = sshll.u32 %s1631_s9, 3  ;;  %s346_s3 = scalar_lea.vmem [#allocation5], %s1174_s20 }
  0x44   : > { %s1845_s14 = scalar_select %p49_p11, %s1623_s29, %s51_s25  }
  0x45   : > { %s351_s6 = scalar_lea.hbm %s2005_s0, %s1175_s11  ;;  %s355_s7 = sshll.u32 %s346_s3, 4  ;;  %s356_s7 = int_to_ptr.vmem [resolvable:$true] %s355_s7 }
  0x46   : > { %s353_s27 = sshll.u32 %s351_s6, 4  ;;  %p1241_p2 = pnand %p1253_p13, %p1836_p3  ;;  %s354_s27 = int_to_ptr.hbm [resolvable:$true] %s353_s27 }
  0x47   : > { %s343_s21 = scalar_lea.sflag [#allocation6], %s342_s16  ;;  %364 = sbr.rel (%p1755_p8) target bundleno = 1527 (0x5f7), region = 48 }
  0x48   : > { %1243 = dma.hbm_to_vmem [thread:$0]  (!%p1241_p2), %s354_s27, 128, %s356_s7, %s343_s21  }
  0x49   : > { %s1857_s22 = sand.u32 (!%p1755_p8), 1, %s1619_s28  }
  0x4a   : > { %s1177_s25 = sshll.u32 (!%p1755_p8), %s1857_s22, 3  ;;  %s367_s23 = scalar_lea.sflag (!%p1755_p8), [#allocation6], %s1857_s22 }
  0x4b   : > { %s370_s20 = scalar_lea.vmem (!%p1755_p8), [#allocation5], %s1177_s25 }
  0x4c   : > { %1594 = dma.done.wait (%p1742_p4), %s367_s23, 128  }
  0x4d   : > { %1596 = vsyncadd (%p1742_p4), %s367_s23, 4294967168 }
  0x4e   : > { %1598 = dma.done.wait (%p1742_p4), [#allocation9], 256  }
  0x4f   : > { %1600 = vsyncadd (%p1742_p4), [#allocation9], 4294967040 }
  0x50   : > { %1602 = dma.done.wait (%p1732_p1), [#allocation12], 1024  }
  0x51   : > { %1604 = vsyncadd (%p1732_p1), [#allocation12], 4294966272  ;;  %v437_v0 = vld [vmem:[#allocation11 + $0x10] sm:$0xff]  ;;  %v438_v1 = vld [vmem:[#allocation11 + $0x18] sm:$0xff]  ;;  %s1643_s18 = smov 96   ;;  %vm455_vm0 = vcmask 261120  }
  0x52   : > { %v1321_v2 = vpack.i.bf16 %v437_v0, %v438_v1  ;;  %545 = vmatpush.msra.mxu2 %v438_v1  ;;  %v435_v3 = vld [vmem:[#allocation11] sm:$0xff]  ;;  %v436_v4 = vld [vmem:[#allocation11 + $0x8] sm:$0xff]  ;;  %v433_v13 = vld [vmem:[#allocation8] sm:$0xff]  ;;  %vm555_vm1 = vcmask 64512   ;;  %s1644_s13 = smov 104   ;;  %s1645_s15 = smov 112  }
  0x53   : > { %v1326_v5 = vpack.i.bf16 %v435_v3, %v436_v4  ;;  %v1875_v6 = vld [vmem:[%s370_s20] sm:$0xff]  ;;  %s1646_s26 = smov 120   ;;  %s1647_s16 = smov 64   ;;  %v434_v33 = vld [vmem:[#allocation10] sm:$0xff] }
  0x54   : > { %1322 = vrot.lane.b32.xlu0 %v1321_v2, %s1643_s18  ;;  %546 = vmatpush.msra.mxu2 %v437_v0  ;;  %s1181_s11 = sshll.u32 %s1857_s22, 5  ;;  %s1648_s12 = smov 8  }
  0x55   : > { %s1917_s19 = scalar_lea.vmem [#allocation15], %s1181_s11  ;;  %s1649_s6 = smov 16  }
  0x56   : > { %547 = vmatpush.msra.mxu2 %v436_v4  ;;  %s1650_s3 = smov 24   ;;  %s1208_s7 = sshll.u32 %s1627_s30, 5 }
  0x57   : > { %s1002_s23 = scalar_lea.hbm %s2013_s8, %s1208_s7  ;;  %s1003_s20 = sshll.u32 %s1917_s19, 4  ;;  %s1004_s20 = int_to_ptr.vmem [resolvable:$true] %s1003_s20 }
  0x58   : > { %548 = vmatpush.msra.mxu2 %v435_v3  ;;  %s1533_s30 = scalar_lea.hbm %s2013_s8, 64 }
  0x59   : > { %1184 = vmatmul.msk.f32.vlgmr.msra.gmra.mxu2 %vm455_vm0, %v1875_v6 }
  0x5c   : > { %1327 = vrot.lane.b32.xlu0 %v1326_v5, %s1643_s18  ;;  %s1005_s18 = sshll.u32 %s1002_s23, 4  ;;  %s1006_s18 = int_to_ptr.hbm [resolvable:$true] %s1005_s18 }
  0xc6   : > { %v1323_v7 = vpop.permute.xlu0 %1322 }
  0xc7   : > { %v1324_v8 = vunpack.i.l.bf16 %v1323_v7  ;;  %v1325_v9 = vunpack.i.h.bf16 %v1323_v7 }
  0xc9   : > { %471 = vmatpush.msra.mxu0 %v1324_v8 }
  0xcb   : > { %472 = vmatpush.msra.mxu0 %v1325_v9 }
  0xce   : > { %v1328_v10 = vpop.permute.xlu0 %1327 }
  0xcf   : > { %v1329_v11 = vunpack.i.l.bf16 %v1328_v10  ;;  %v1330_v12 = vunpack.i.h.bf16 %v1328_v10 }
  0xd1   : > { %473 = vmatpush.msra.mxu0 %v1329_v11 }
  0xd3   : > { %474 = vmatpush.msra.mxu0 %v1330_v12 }
  0xd4   : > { %1182 = vmatmul.msk.f32.vlgmr.msra.gmra.mxu0 %vm455_vm0, %v433_v13 }
  0xdc   : > { %v550_v16 = vpop.f32.mrf.mxu2 }
 0x151   : > { %v476_v14 = vpop.f32.mrf.mxu0 }
 0x152   : > { %479 = vst.msk [vmem:[#allocation2] sm:$0xff] %vm455_vm0, %v476_v14 }
 0x159   : > { %v811_v15 = vld [vmem:[#allocation2] sm:$0xff] }
 0x15a   : > { %816 = vrot.lane.b32.xlu0 %v811_v15, %s1644_s13  ;;  %726 = vrot.lane.b32.xlu1 %v811_v15, %s1645_s15 }
 0x15b   : > { %636 = vrot.lane.b32.xlu2 %v811_v15, %s1646_s26  ;;  %1185 = vmatpush.xpose.msk.msra.mxu3 %vm555_vm1, %v811_v15 }
 0x15e   : > { %1186 = vmatmul.msk.f32.vlgmr.msra.gmra.mxu3 %vm555_vm1, %v550_v16 }
 0x162   : > { %723 = vrot.lane.b32.xlu1 %v550_v16, %s1645_s15  ;;  %1337 = vrot.lane.b32.xlu0 %v1326_v5, %s1647_s16 }
 0x163   : > { %633 = vrot.lane.b32.xlu2 %v550_v16, %s1646_s26 }
 0x16a   : > { %813 = vrot.lane.b32.xlu1 %v550_v16, %s1644_s13 }
 0x16b   : > { %1332 = vrot.lane.b32.xlu2 %v1321_v2, %s1647_s16 }
 0x1b5   : > { %v637_v17 = vpop.permute.xlu2 %636 }
 0x1b6   : > { %1188 = vmatpush.xpose.msk.msrb.mxu0 %vm555_vm1, %v637_v17 }
 0x1bd   : > { %v634_v18 = vpop.permute.xlu2 %633 }
 0x1be   : > { %1189 = vmatmul.msk.f32.vlgmr.msrb.gmra.mxu0 %vm555_vm1, %v634_v18 }
 0x1c5   : > { %v1333_v25 = vpop.permute.xlu2 %1332 }
 0x1c6   : > { %v1334_v26 = vunpack.i.l.bf16 %v1333_v25  ;;  %v1335_v29 = vunpack.i.h.bf16 %v1333_v25 }
 0x1c8   : > { %515 = vmatpush.msra.mxu1 %v1334_v26 }
 0x1ca   : > { %516 = vmatpush.msra.mxu1 %v1335_v29 }
 0x1cc   : > { %v817_v19 = vpop.permute.xlu0 %816  ;;  %v727_v20 = vpop.permute.xlu1 %726 }
 0x1cd   : > { %1192 = vmatpush.xpose.msk.msrb.mxu2 %vm555_vm1, %v727_v20  ;;  %1196 = vmatpush.xpose.msk.msra.mxu0 %vm555_vm1, %v817_v19 }
 0x1d4   : > { %v724_v21 = vpop.permute.xlu1 %723  ;;  %v1338_v28 = vpop.permute.xlu0 %1337 }
 0x1d5   : > { %1193 = vmatmul.msk.f32.vlgmr.msrb.gmra.mxu2 %vm555_vm1, %v724_v21  ;;  %v1339_v31 = vunpack.i.l.bf16 %v1338_v28  ;;  %v1340_v32 = vunpack.i.h.bf16 %v1338_v28 }
 0x1d7   : > { %517 = vmatpush.msra.mxu1 %v1339_v31 }
 0x1d9   : > { %518 = vmatpush.msra.mxu1 %v1340_v32 }
 0x1da   : > { %1183 = vmatmul.msk.f32.vlgmr.msra.gmra.mxu1 %vm455_vm0, %v434_v33 }
 0x1dc   : > { %v814_v22 = vpop.permute.xlu1 %813 }
 0x1dd   : > { %1197 = vmatmul.msk.f32.vlgmr.msra.gmra.mxu0 %vm555_vm1, %v814_v22 }
 0x1e1   : > { %v579_v23 = vpop.f32.mrf.mxu3 }
 0x1e2   : > { %v582_v24 = vsel %vm555_vm1, %v579_v23, -inf }
 0x1e3   : > { %583 = vmax.xlane.f32.xlu1 %v582_v24 }
 0x23b   : > { %v659_v27 = vpop.f32.mrf.mxu0 }
 0x23c   : > { %v662_v30 = vsel %vm555_vm1, %v659_v27, -inf }
 0x23d   : > { %663 = vmax.xlane.f32.xlu2 %v662_v30 }
 0x256   : > { %v584_v34 = vpop.xlane.xlu1 %583 }
 0x257   : > { %v585_v35 = vsub.f32 %v579_v23, %v584_v34  ;;  %v520_v48 = vpop.f32.mrf.mxu1 }
 0x258   : > { %v749_v36 = vpop.f32.mrf.mxu2  ;;  %523 = vst.msk [vmem:[#allocation3] sm:$0xff] %vm455_vm0, %v520_v48 }
 0x259   : > { %v586_v37 = vmul.f32 1.442695, %v585_v35  ;;  %v752_v38 = vsel %vm555_vm1, %v749_v36, -inf }
 0x25a   : > { %753 = vmax.xlane.f32.xlu0 %v752_v38  ;;  %v839_v39 = vpop.f32.mrf.mxu0 }
 0x25b   : > { %1343 = vpow2.f32 %v586_v37  ;;  %v842_v40 = vsel %vm555_vm1, %v839_v39, -inf }
 0x25c   : > { %843 = vmax.xlane.f32.xlu2 %v842_v40 }
 0x25f   : > { %v632_v49 = vld [vmem:[#allocation3] sm:$0xff] }
 0x260   : > { %624 = vmatpush.msrb.mxu3 %v632_v49 }
 0x261   : > { %v1344_v41 = vpop.eup %1343 }
 0x262   : > { %v588_v42 = vsel %vm555_vm1, %v1344_v41, 0.0 }
 0x263   : > { %589 = vadd.xlane.f32.xlu1 %v588_v42 }
 0x2b0   : > { %v664_v43 = vpop.xlane.xlu2 %663 }
 0x2b1   : > { %v665_v44 = vsub.f32 %v659_v27, %v664_v43 }
 0x2b3   : > { %v666_v45 = vmul.f32 1.442695, %v665_v44 }
 0x2b5   : > { %1345 = vpow2.f32 %v666_v45 }
 0x2bb   : > { %v1901_v46 = vpop.eup %1345 }
 0x2bc   : > { %v668_v47 = vsel %vm555_vm1, %v1901_v46, 0.0 }
 0x2bd   : > { %669 = vadd.xlane.f32.xlu2 %v668_v47 }
 0x2cd   : > { %v754_v50 = vpop.xlane.xlu0 %753 }
 0x2ce   : > { %v755_v51 = vsub.f32 %v749_v36, %v754_v50 }
 0x2cf   : > { %v844_v52 = vpop.xlane.xlu2 %843 }
 0x2d0   : > { %v756_v53 = vmul.f32 1.442695, %v755_v51  ;;  %v845_v54 = vsub.f32 %v839_v39, %v844_v52 }
 0x2d2   : > { %1347 = vpow2.f32 %v756_v53  ;;  %v846_v55 = vmul.f32 1.442695, %v845_v54  ;;  %v905_v53 = vld [vmem:[#allocation13 + $0x18] sm:$0xff]  ;;  %v904_v54 = vld [vmem:[#allocation13 + $0x10] sm:$0xff] }
 0x2d3   : > { %921 = vmatpush.msra.mxu2 %v905_v53 }
 0x2d4   : > { %1349 = vpow2.f32 %v846_v55  ;;  %v903_v55 = vld [vmem:[#allocation13 + $0x8] sm:$0xff] }
 0x2d5   : > { %687 = vrot.lane.b32.xlu2 %v632_v49, %s1646_s26  ;;  %922 = vmatpush.msra.mxu2 %v904_v54 }
 0x2d6   : > { %v590_v56 = vpop.xlane.xlu1 %589 }
 0x2d7   : > { %1351 = vrcp.f32 %v590_v56  ;;  %v602_v0 = vand.u32 2147483648, %v590_v56  ;;  %v600_v2 = vand.u32 2147483647, %v590_v56  ;;  %vm596_vm3 = vweird.f32 %v590_v56  ;;  %923 = vmatpush.msra.mxu2 %v903_v55 }
 0x2d8   : > { %v1907_v57 = vpop.eup %1347 }
 0x2d9   : > { %v758_v58 = vsel %vm555_vm1, %v1907_v57, 0.0  ;;  %v603_v4 = vor.u32 1.1754944e-38, %v602_v0  ;;  %vm601_vm5 = vcmp.eq.f32.partialorder %v600_v2, 8.507059e+37 }
 0x2da   : > { %v1911_v59 = vpop.eup %1349  ;;  %759 = vadd.xlane.f32.xlu0 %v758_v58 }
 0x2db   : > { %v848_v60 = vsel %vm555_vm1, %v1911_v59, 0.0 }
 0x2dc   : > { %849 = vadd.xlane.f32.xlu1 %v848_v60 }
 0x2dd   : > { %v1352_v61 = vpop.eup %1351 }
 0x2de   : > { %v592_v62 = vmul.f32 %v1352_v61, %v590_v56  ;;  %vm597_vm2 = vweird.f32 %v1352_v61  ;;  %v902_v56 = vld [vmem:[#allocation13] sm:$0xff] }
 0x2df   : > { %vm598_vm4 = vmor %vm596_vm3, %vm597_vm2  ;;  %924 = vmatpush.msra.mxu2 %v902_v56 }
 0x2e0   : > { %v593_v63 = vsub.f32 1.0, %v592_v62 }
 0x2e2   : > { %v594_v1 = vmul.f32 %v1352_v61, %v593_v63  ;;  %v1651_v63 = vmov 32.0  }
 0x2e4   : > { %v595_v3 = vadd.f32 %v1352_v61, %v594_v1 }
 0x2e6   : > { %v599_v5 = vsel %vm598_vm4, %v1352_v61, %v595_v3  ;;  %vm717_vm4 = vcmask 130112  }
 0x2e7   : > { %v604_v7 = vsel %vm601_vm5, %v603_v4, %v599_v5  ;;  %vm807_vm5 = vcmask 195712  }
 0x2e8   : > { %v605_v8 = vmul.f32 %v1344_v41, %v604_v7 }
 0x2ea   : > { %1187 = vmatmul.msk.f32.vlgmr.msrb.gmra.mxu3 %vm555_vm1, %v605_v8  ;;  %630 = vst.msk [vmem:[%s1917_s19] sm:$0xff] %vm555_vm1, %v605_v8 }
 0x2ee   : > { %777 = vrot.lane.b32.xlu0 %v632_v49, %s1645_s15  ;;  %s1527_s15 = sshra.s32 %s1006_s18, 4  ;;  %s1528_s15 = int_to_ptr.hbm [resolvable:$true] %s1527_s15 }
 0x2ef   : > { %s1529_s26 = scalar_lea.hbm %s1528_s15, 32  ;;  %p1534_p5 = scmp.lt.s32.totalorder %s1528_s15, %s2013_s8 }
 0x2f0   : > { %p1530_p1 = scmp.ne.s32.totalorder %s1528_s15, %s1529_s26  ;;  %p1535_p7 = scmp.lt.s32.totalorder %s1533_s30, %s1529_s26 }
 0x2f2   : > { %p1531_p4 = pnand %p1530_p1, %p1829_p12  ;;  %p1536_p9 = por %p1535_p7, %p1534_p5 }
 0x2f4   : > { %p1532_p8 = pneg %p1531_p4 }
 0x2f5   : > { %867 = vrot.lane.b32.xlu1 %v632_v49, %s1644_s13  ;;  %s975_s13 = scalar_lea.sflag [#allocation16], %s1857_s22 }
 0x2f6   : > { %p1537_p10 = pnand %p1536_p9, %p1532_p8 }
 0x330   : > { %v670_v9 = vpop.xlane.xlu2 %669 }
 0x331   : > { %1353 = vrcp.f32 %v670_v9  ;;  %v682_v14 = vand.u32 2147483648, %v670_v9  ;;  %v680_v16 = vand.u32 2147483647, %v670_v9  ;;  %vm676_vm7 = vweird.f32 %v670_v9 }
 0x333   : > { %v683_v18 = vor.u32 1.1754944e-38, %v682_v14  ;;  %vm681_vm9 = vcmp.eq.f32.partialorder %v680_v16, 8.507059e+37 }
 0x337   : > { %v1354_v10 = vpop.eup %1353 }
 0x338   : > { %v672_v11 = vmul.f32 %v1354_v10, %v670_v9  ;;  %v688_v12 = vpop.permute.xlu2 %687  ;;  %vm677_vm6 = vweird.f32 %v1354_v10 }
 0x339   : > { %708 = vmatpush.msrb.mxu1 %v688_v12  ;;  %vm678_vm8 = vmor %vm676_vm7, %vm677_vm6 }
 0x33a   : > { %v673_v13 = vsub.f32 1.0, %v672_v11 }
 0x33c   : > { %v674_v15 = vmul.f32 %v1354_v10, %v673_v13 }
 0x33e   : > { %v675_v17 = vadd.f32 %v1354_v10, %v674_v15 }
 0x340   : > { %v679_v19 = vsel %vm678_vm8, %v1354_v10, %v675_v17 }
 0x341   : > { %v684_v20 = vsel %vm681_vm9, %v683_v18, %v679_v19 }
 0x342   : > { %v685_v21 = vmul.f32 %v1901_v46, %v684_v20 }
 0x344   : > { %1190 = vmatmul.msk.f32.vlgmr.msrb.gmra.mxu1 %vm555_vm1, %v685_v21  ;;  %1191 = vst.msk [vmem:[%s1917_s19 + $0x8] sm:$0xff] %vm555_vm1, %v685_v21 }
 0x34d   : > { %v760_v22 = vpop.xlane.xlu0 %759 }
 0x34e   : > { %1355 = vrcp.f32 %v760_v22  ;;  %v772_v29 = vand.u32 2147483648, %v760_v22  ;;  %v770_v31 = vand.u32 2147483647, %v760_v22  ;;  %vm766_vm11 = vweird.f32 %v760_v22 }
 0x34f   : > { %v850_v23 = vpop.xlane.xlu1 %849 }
 0x350   : > { %1357 = vrcp.f32 %v850_v23  ;;  %v862_v33 = vand.u32 2147483648, %v850_v23  ;;  %v860_v36 = vand.u32 2147483647, %v850_v23  ;;  %v773_v37 = vor.u32 1.1754944e-38, %v772_v29 }
 0x351   : > { %vm771_vm14 = vcmp.eq.f32.partialorder %v770_v31, 8.507059e+37  ;;  %vm856_vm15 = vweird.f32 %v850_v23  ;;  %1359 = vrcp.f32 %v1651_v63 }
 0x352   : > { %v863_v41 = vor.u32 1.1754944e-38, %v862_v33  ;;  %vm861_vm3 = vcmp.eq.f32.partialorder %v860_v36, 8.507059e+37 }
 0x354   : > { %v1356_v24 = vpop.eup %1355 }
 0x355   : > { %v762_v25 = vmul.f32 %v1356_v24, %v760_v22  ;;  %vm767_vm10 = vweird.f32 %v1356_v24 }
 0x356   : > { %v1358_v26 = vpop.eup %1357  ;;  %vm768_vm13 = vmor %vm766_vm11, %vm767_vm10 }
 0x357   : > { %v763_v27 = vsub.f32 1.0, %v762_v25  ;;  %v852_v28 = vmul.f32 %v1358_v26, %v850_v23  ;;  %vm857_vm12 = vweird.f32 %v1358_v26  ;;  %v1360_v0 = vpop.eup %1359 }
 0x358   : > { %vm858_vm2 = vmor %vm856_vm15, %vm857_vm12  ;;  %v933_v1 = vmul.f32 32.0, %v1360_v0  ;;  %vm937_vm6 = vweird.f32 %v1360_v0 }
 0x359   : > { %v764_v30 = vmul.f32 %v1356_v24, %v763_v27  ;;  %v853_v32 = vsub.f32 1.0, %v852_v28 }
 0x35a   : > { %v934_v2 = vsub.f32 1.0, %v933_v1 }
 0x35b   : > { %v765_v34 = vadd.f32 %v1356_v24, %v764_v30  ;;  %v854_v35 = vmul.f32 %v1358_v26, %v853_v32 }
 0x35c   : > { %v935_v3 = vmul.f32 %v1360_v0, %v934_v2 }
 0x35d   : > { %v769_v38 = vsel %vm768_vm13, %v1356_v24, %v765_v34  ;;  %v855_v39 = vadd.f32 %v1358_v26, %v854_v35 }
 0x35e   : > { %v774_v40 = vsel %vm771_vm14, %v773_v37, %v769_v38  ;;  %v936_v4 = vadd.f32 %v1360_v0, %v935_v3 }
 0x35f   : > { %v859_v42 = vsel %vm858_vm2, %v1358_v26, %v855_v39  ;;  %v775_v43 = vmul.f32 %v1907_v57, %v774_v40 }
 0x360   : > { %v864_v44 = vsel %vm861_vm3, %v863_v41, %v859_v42  ;;  %v778_v45 = vpop.permute.xlu0 %777  ;;  %v938_v5 = vsel %vm937_vm6, %v1360_v0, %v936_v4 }
 0x361   : > { %798 = vmatpush.msra.mxu3 %v778_v45  ;;  %1195 = vst.msk [vmem:[%s1917_s19 + $0x10] sm:$0xff] %vm555_vm1, %v775_v43  ;;  %v865_v46 = vmul.f32 %v1911_v59, %v864_v44 }
 0x362   : > { %1194 = vmatmul.msk.f32.vlgmr.msra.gmra.mxu3 %vm555_vm1, %v775_v43 }
 0x363   : > { %1199 = vst.msk [vmem:[%s1917_s19 + $0x18] sm:$0xff] %vm555_vm1, %v865_v46 }
 0x367   : > { %v868_v47 = vpop.permute.xlu1 %867 }
 0x368   : > { %888 = vmatpush.msra.mxu1 %v868_v47 }
 0x369   : > { %1198 = vmatmul.msk.f32.vlgmr.msra.gmra.mxu1 %vm555_vm1, %v865_v46 }
 0x36d   : > { %v626_v48 = vpop.f32.mrf.mxu3 }
 0x36e   : > { %629 = vst.msk [vmem:[#allocation4] sm:$0xff] %vm555_vm1, %v626_v48  ;;  %vm897_vm1 = vcmask 261312  }
 0x3c1   : > { %v710_v49 = vpop.f32.mrf.mxu1 }
 0x3c2   : > { %714 = vrot.lane.b32.xlu0 %v710_v49, %s1648_s12 }
 0x3e5   : > { %v800_v50 = vpop.f32.mrf.mxu3 }
 0x3e6   : > { %804 = vrot.lane.b32.xlu2 %v800_v50, %s1649_s6  ;;  %v890_v51 = vpop.f32.mrf.mxu1 }
 0x3e7   : > { %894 = vrot.lane.b32.xlu1 %v890_v51, %s1650_s3 }
 0x434   : > { %v715_v52 = vpop.permute.xlu0 %714 }
 0x435   : > { %718 = vst.msk [vmem:[#allocation4] sm:$0xff] %vm717_vm4, %v715_v52 }
 0x440   : > { %v805_v57 = vpop.permute.xlu2 %804 }
 0x441   : > { %808 = vst.msk [vmem:[#allocation4] sm:$0xff] %vm807_vm5, %v805_v57 }
 0x459   : > { %v895_v58 = vpop.permute.xlu1 %894 }
 0x45a   : > { %898 = vst.msk [vmem:[#allocation4] sm:$0xff] %vm897_vm1, %v895_v58 }
 0x461   : > { %v901_v59 = vld [vmem:[#allocation4] sm:$0xff] }
 0x462   : > { %1200 = vmatmul.msk.f32.vlgmr.msra.gmra.mxu2 %vm455_vm0, %v901_v59 }
 0x4e5   : > { %v926_v60 = vpop.f32.mrf.mxu2 }
 0x4e6   : > { %v927_v61 = vadd.f32 %v926_v60, %v1875_v6 }
 0x4e8   : > { %v929_v62 = vsel %vm455_vm0, %v927_v61, 0.0 }
 0x4e9   : > { %930 = vadd.xlane.f32.xlu0 %v929_v62 }
 0x55c   : > { %v931_v7 = vpop.xlane.xlu0 %930 }
 0x55d   : > { %v939_v8 = vmul.f32 %v938_v5, %v931_v7 }
 0x55f   : > { %v940_v9 = vsub.f32 %v927_v61, %v939_v8 }
 0x561   : > { %v941_v6 = vmul.f32 %v940_v9, %v940_v9 }
 0x563   : > { %v942_v10 = vsel %vm455_vm0, %v941_v6, 0.0 }
 0x564   : > { %943 = vadd.xlane.f32.xlu2 %v942_v10 }
 0x565   : > { %1540 = shalt.err (!%p1537_p10)
}
 0x566   : > { %s1652_s19 = smov 128   ;;  %v1341_v20 = vld [vmem:[%s2010_s5] ss:$0 sm:$0xff]  ;;  %s2034_s23 = sld [smem:[#allocation27_spill]] }
 0x567   : > { %1224 = dma.vmem_to_hbm [thread:$0]  (%p1829_p12), %s1004_s20, 512, %s1006_s18, %s975_s13, %s1652_s19, %s1652_s19, %s1648_s12  }
 0x568   : > { %s2035_s15 = sld [smem:[#allocation26_spill]]  ;;  %s421_s26 = scalar_lea.vmem [#allocation14], %s1177_s25 }
 0x569   : > { %s988_s16 = sshll.u32 %s421_s26, 4  ;;  %s970_s30 = scalar_lea.sflag [#allocation7], %s1857_s22  ;;  %s989_s16 = int_to_ptr.vmem [resolvable:$true] %s988_s16 }
 0x56c   : > { %s986_s20 = scalar_lea.hbm %s2034_s23, %s1753_s17  ;;  %s1561_s25 = scalar_lea.hbm %s2034_s23, 16 }
 0x56d   : > { %s990_s11 = sshll.u32 %s986_s20, 4  ;;  %s991_s11 = int_to_ptr.hbm [resolvable:$true] %s990_s11 }
 0x56e   : > { %v1342_v23 = vld [vmem:[%s2035_s15] ss:$0 sm:$0xff]  ;;  %s1555_s6 = sshra.s32 %s991_s11, 4  ;;  %s1556_s6 = int_to_ptr.hbm [resolvable:$true] %s1555_s6 }
 0x56f   : > { %s1557_s17 = scalar_lea.hbm %s1556_s6, 8  ;;  %p1562_p3 = scmp.lt.s32.totalorder %s1556_s6, %s2034_s23 }
 0x570   : > { %p1558_p0 = scmp.ne.s32.totalorder %s1556_s6, %s1557_s17  ;;  %p1563_p11 = scmp.lt.s32.totalorder %s1561_s25, %s1557_s17 }
 0x572   : > { %p1559_p6 = pnand %p1558_p0, %p1829_p12  ;;  %p1564_p2 = por %p1563_p11, %p1562_p3 }
 0x574   : > { %p1560_p13 = pneg %p1559_p6 }
 0x576   : > { %p1565_p1 = pnand %p1564_p2, %p1560_p13 }
 0x5d7   : > { %v944_v11 = vpop.xlane.xlu2 %943 }
 0x5d8   : > { %v945_v12 = vmul.f32 %v944_v11, %v938_v5 }
 0x5da   : > { %v946_v13 = vadd.f32 1e-06, %v945_v12 }
 0x5dc   : > { %1361 = vrsqrt.f32 %v946_v13  ;;  %vm953_vm8 = vweird.f32 %v946_v13 }
 0x5e2   : > { %v1362_v14 = vpop.eup %1361 }
 0x5e3   : > { %v948_v15 = vmul.f32 %v1362_v14, %v946_v13  ;;  %vm954_vm7 = vweird.f32 %v1362_v14 }
 0x5e4   : > { %vm955_vm9 = vmor %vm953_vm8, %vm954_vm7 }
 0x5e5   : > { %v949_v16 = vmul.f32 %v1362_v14, %v948_v15 }
 0x5e7   : > { %v950_v17 = vmul.f32 0.5, %v949_v16 }
 0x5e9   : > { %v951_v18 = vsub.f32 1.5, %v950_v17 }
 0x5eb   : > { %v952_v19 = vmul.f32 %v1362_v14, %v951_v18 }
 0x5ed   : > { %v956_v21 = vsel %vm955_vm9, %v1362_v14, %v952_v19 }
 0x5ee   : > { %v957_v22 = vmul.f32 %v956_v21, %v940_v9 }
 0x5f0   : > { %v962_v24 = vmul.f32 %v1341_v20, %v957_v22 }
 0x5f2   : > { %v967_v25 = vadd.f32 %v1342_v23, %v962_v24 }
 0x5f4   : > { %968 = vst.msk [vmem:[%s421_s26] sm:$0xff] %vm455_vm0, %v967_v25 }
 0x5f5   : > { %1568 = shalt.err (!%p1565_p1)
}
 0x5f6   : > { %1223 = dma.vmem_to_hbm [thread:$0]  (%p1829_p12), %s989_s16, 128, %s991_s11, %s970_s30  }
 0x5f7 PF: > { %s2036_s22 = sld [smem:[#allocation22_spill]]  ;;  %p2039_p8 = scmp.ge.s32.totalorder %s1635_s10, 2 }
 0x5f8   : > { %s2037_s12 = sld [smem:[#allocation23_spill]] }
 0x5fd   : > { %s1020_s21 = sand.u32 1, %s2036_s22  }
 0x5fe   : > { %p2038_p4 = scmp.ne.s32.totalorder %s2037_s12, 0  ;;  %s1021_s20 = scalar_lea.sflag [#allocation7], %s1020_s21 }
 0x600   : > { %p1245_p5 = pnand %p2039_p8, %p2038_p4 }
 0x602   : > { %p1246_p7 = pneg %p1245_p5 }
 0x604   : > { %1606 = dma.done.wait (%p1246_p7), %s1021_s20, 128  }
 0x605   : > { %1608 = vsyncadd (%p1246_p7), %s1021_s20, 4294967168  ;;  %s1031_s18 = scalar_lea.sflag [#allocation16], %s1020_s21 }
 0x606   : > { %1610 = dma.done.wait (%p1246_p7), %s1031_s18, 512  }
 0x607   : > { %1612 = vsyncadd (%p1246_p7), %s1031_s18, 4294966784  ;;  %s30_s10 = sadd.s32 1, %s1635_s10   ;;  %s2040_s27 = smov %s1619_s28 }
 0x608   : > { %p27_p9 = scmp.ge.s32.totalorder %s30_s10, 4   ;;  %s2041_s28 = smov %s1623_s29 }
 0x609   : > { %s2042_s29 = smov %s1845_s14  ;;  %s2043_s30 = smov %s1631_s9 }
 0x60a   : > { %s2044_s9 = smov %s2046_s24  ;;  %29 = sbr.rel (!%p27_p9) target bundleno = 15 (0xf), region = 135 }
 0x60f   :  { %1037 = vsyncpa [#allocation6], 1 }
 0x610   :  { %1039 = vsyncpa [#allocation6 + $0x1], 1 }
 0x611   :  { %1040 = vsyncpa [#allocation9], 1 }
 0x612   :  { %1041 = vsyncpa [#allocation12], 1 }
 0x613   :  { %1042 = vsyncpa [#allocation7], 1 }
 0x614   :  { %1044 = vsyncpa [#allocation7 + $0x1], 1 }
 0x615   :  { %1045 = vsyncpa [#allocation16], 1 }
 0x616   :  { %1047 = vsyncpa [#allocation16 + $0x1], 1 }

// kernel: tpu_custom_call.1
= control target key start
LH: loop header
LB: loop body
LE: loop exit
PB: predicated region body
PF: predicated region fallthrough
CT: control target
= control target key end

     0   :  { %s2037_s0 = inlined_call_operand.hbm [shape: f32[2,8,32], index: 0, kind: input, shape index: {}]   ;;  %s2038_s1 = inlined_call_operand.hbm [shape: f32[2,8,32], index: 1, kind: input, shape index: {}]   ;;  %s2039_s2 = inlined_call_operand.hbm [shape: f32[2,8,32], index: 2, kind: input, shape index: {}]   ;;  %s2040_s3 = inlined_call_operand.hbm [shape: f32[32,96], index: 3, kind: input, shape index: {}]   ;;  %s2041_s4 = inlined_call_operand.hbm [shape: f32[32,32], index: 4, kind: input, shape index: {}]   ;;  %s2042_s5 = inlined_call_operand.vmem [shape: f32[1,32], index: 5, kind: input, shape index: {}]   ;;  %s2043_s6 = inlined_call_operand.vmem [shape: f32[1,32], index: 6, kind: input, shape index: {}]   ;;  %s2044_s7 = inlined_call_operand.hbm [shape: f32[2,8,32], index: 7, kind: output, shape index: {0}]   ;;  %s2045_s8 = inlined_call_operand.hbm [shape: f32[2,4,8,8], index: 8, kind: output, shape index: {1}]  }
   0x1   :  { %2056 = sst [smem:[#allocation29_spill]] %s2038_s1 }
   0x2   :  { %2057 = sst [smem:[#allocation30_spill]] %s2040_s3 }
   0x3   :  { %2058 = sst [smem:[#allocation31_spill]] %s2041_s4 }
   0x4   :  { %2059 = sst [smem:[#allocation32_spill]] %s2042_s5 }
   0x5   :  { %2060 = sst [smem:[#allocation33_spill]] %s2043_s6 }
   0x6   :  { %2061 = sst [smem:[#allocation34_spill]] %s2044_s7 }
   0x7   :  { %14 = vsyncpa [#allocation6], 0 }
   0x8   :  { %16 = vsyncpa [#allocation6 + $0x1], 0 }
   0x9   :  { %17 = vsyncpa [#allocation9], 0 }
   0xa   :  { %19 = vsyncpa [#allocation9 + $0x1], 0 }
   0xb   :  { %20 = vsyncpa [#allocation12], 0 }
   0xc   :  { %21 = vsyncpa [#allocation7], 0 }
   0xd   :  { %23 = vsyncpa [#allocation7 + $0x1], 0 }
   0xe   :  { %24 = vsyncpa [#allocation16], 0 }
   0xf   :  { %26 = vsyncpa [#allocation16 + $0x1], 0  ;;  %s1750_s27 = smov 0   ;;  %s1752_s28 = smov 0  }
  0x10   :  { %s1754_s29 = smov 0   ;;  %s1756_s30 = smov 0  }
  0x11   :  { %s1758_s9 = smov 0   ;;  %s1760_s10 = smov 0  }
  0x12 LB: > { %2062 = sst [smem:[#allocation22_spill]] %s1669_s27  ;;  %s1781_s11 = sadd.s32 4294967295, %s1689_s10   ;;  %s1689_s10 = sphi %s1760_s10, %s32_s10   ;;  %s1685_s9 = sphi %s1758_s9, %s2091_s9   ;;  %s1681_s30 = sphi %s1756_s30, %s2090_s30   ;;  %s1677_s29 = sphi %s1754_s29, %s2089_s29   ;;  %s1673_s28 = sphi %s1752_s28, %s2093_s28   ;;  %s1669_s27 = sphi %s1750_s27, %s2092_s27  }
  0x13   : > { %2063 = sst [smem:[#allocation23_spill]] %s1677_s29  ;;  %p1220_p0 = scmp.ge.s32.totalorder %s1689_s10, 1 }
  0x14   : > { %2064 = sst [smem:[#allocation24_spill]] %s1685_s9  ;;  %p67_p1 = scmp.eq.s32.totalorder %s1781_s11, 0 }
  0x15   : > { %2065 = sst [smem:[#allocation25_spill]] %s1689_s10  ;;  %p269_p2 = scmp.lt.s32.totalorder %s1689_s10, 3 }
  0x16   : > { %s2066_s3 = sld [smem:[#allocation30_spill]]  ;;  %s1691_s16 = smov [#allocation11]  }
  0x17   : > { %p1789_p3 = pnand %p1220_p0, %p269_p2  ;;  %s282_s17 = sshll.u32 %s1691_s16, 4  ;;  %s283_s17 = int_to_ptr.vmem [resolvable:$true] %s282_s17 }
  0x18   : > { %s2046_s19 = smov 128   ;;  %s2047_s20 = smov 8  }
  0x19   : > { %p1283_p4 = pneg %p1789_p3  ;;  %s1219_s21 = sadd.s32 4294967294, %s1689_s10  }
  0x1a   : > { %s44_s22 = sadd.s32 1, %s1685_s9  ;;  %s53_s23 = sadd.s32 1, %s1677_s29 }
  0x1b   : > { %p1797_p5 = pnand %p1283_p4, %p67_p1  ;;  %p46_p7 = scmp.ge.s32.totalorder %s44_s22, 2 }
  0x1c   : > { %s280_s14 = sshll.u32 %s2066_s3, 4  ;;  %p60_p8 = scmp.ne.s32.totalorder %s1677_s29, %s1673_s28  ;;  %s281_s14 = int_to_ptr.hbm [resolvable:$true] %s280_s14 }
  0x1d   : > { %1286 = dma.hbm_to_vmem [thread:$0]  (!%p1797_p5), %s281_s14, 512, %s283_s17, [#allocation12], %s2046_s19, %s2046_s19, %s2047_s20  }
  0x1e   : > { %p61_p9 = scmp.eq.s32.totalorder %s1689_s10, 0  ;;  %p66_p10 = scmp.ne.s32.totalorder %s1673_s28, %s1669_s27 }
  0x1f   : > { %s2095_s22 = smov (%p46_p7, %s44_s22), 0  ;;  %p228_p13 = scmp.eq.s32.totalorder %s1781_s11, 1 }
  0x20   : > { %2069 = sst [smem:[#allocation26_spill]] %s2095_s22  ;;  %p1817_p11 = por %p61_p9, %p60_p8 }
  0x21   : > { %p1823_p12 = por %p67_p1, %p66_p10  ;;  %s48_s26 = ssub.s32 %s1685_s9, %s2095_s22 }
  0x22   : > { %p51_p0 = scmp.eq.s32.totalorder %s48_s26, 0  ;;  %p234_p2 = scmp.eq.s32.totalorder %s1219_s21, 1 }
  0x23   : > { %p1830_p4 = por %p228_p13, %p60_p8  ;;  %p1309_p7 = scmp.lt.s32.totalorder %s1689_s10, 2 }
  0x24   : > { %s1836_s13 = scalar_select %p51_p0, %s1677_s29, %s53_s23  }
  0x25   : > { %p1838_p9 = por %p234_p2, %p66_p10  ;;  %s316_s16 = sand.u32 1, %s1677_s29  }
  0x26   : > { %2073 = sst [smem:[#allocation27_spill]] %s1836_s13  ;;  %s1843_s17 = sshll.u32 %s316_s16, 3 }
  0x27   : > { %s2074_s14 = scalar_select %p1838_p9, 1, 0 }
  0x28   : > { %s1225_s19 = sshll.u32 %s1685_s9, 3  ;;  %p1848_p6 = pnand %p1309_p7, %p1817_p11 }
  0x29   : > { %2075 = sst [smem:[#allocation28_spill]] %s2074_s14  ;;  %s336_s26 = sand.u32 1, %s1689_s10  }
  0x2a   : > { %s2077_s1 = sld [smem:[#allocation29_spill]]  ;;  %s340_s13 = scalar_lea.vmem [#allocation8], %s1843_s17 }
  0x2b   : > { %s348_s29 = sshll.u32 %s340_s13, 4  ;;  %s337_s9 = scalar_lea.sflag [#allocation9], %s336_s26  ;;  %s349_s29 = int_to_ptr.vmem [resolvable:$true] %s348_s29 }
  0x2c   : > { %s2078_s4 = sld [smem:[#allocation31_spill]]  ;;  %s1694_s10 = smov [#allocation13]  }
  0x2d   : > { %s296_s6 = sshll.u32 %s1694_s10, 4  ;;  %s2079_s20 = smov 8   ;;  %s297_s6 = int_to_ptr.vmem [resolvable:$true] %s296_s6 }
  0x2e   : > { %s325_s26 = scalar_lea.hbm %s2037_s0, %s1225_s19  ;;  %s317_s14 = scalar_lea.sflag [#allocation6], %s316_s16 }
  0x2f   : > { %s363_s18 = scalar_lea.hbm %s2039_s2, %s1225_s19  ;;  %s359_s7 = scalar_lea.vmem [#allocation10], %s1843_s17 }
  0x30   : > { %s344_s3 = scalar_lea.hbm %s2077_s1, %s1225_s19  ;;  %s367_s5 = sshll.u32 %s359_s7, 4  ;;  %s368_s5 = int_to_ptr.vmem [resolvable:$true] %s367_s5 }
  0x31   : > { %s346_s22 = sshll.u32 %s344_s3, 4  ;;  %s2080_s3 = smov 128   ;;  %s347_s22 = int_to_ptr.hbm [resolvable:$true] %s346_s22 }
  0x32   : > { %1296 = dma.hbm_to_vmem [thread:$0]  (!%p1848_p6), %s347_s22, 128, %s349_s29, %s337_s9  }
  0x33   : > { %s294_s27 = sshll.u32 %s2078_s4, 4  ;;  %s327_s29 = sshll.u32 %s325_s26, 4  ;;  %s295_s27 = int_to_ptr.hbm [resolvable:$true] %s294_s27  ;;  %s328_s29 = int_to_ptr.hbm [resolvable:$true] %s327_s29 }
  0x34   : > { %1289 = dma.hbm_to_vmem [thread:$0]  (!%p1797_p5), %s295_s27, 512, %s297_s6, [#allocation12], %s2080_s3, %s2080_s3, %s2079_s20  }
  0x35   : > { %s320_s22 = scalar_lea.vmem [#allocation5], %s1843_s17  ;;  %s365_s4 = sshll.u32 %s363_s18, 4  ;;  %s366_s4 = int_to_ptr.hbm [resolvable:$true] %s365_s4 }
  0x36   : > { %s329_s1 = sshll.u32 %s320_s22, 4  ;;  %376 = sbr.rel (%p1789_p3) target bundleno = 1512 (0x5e8), region = 48  ;;  %s330_s1 = int_to_ptr.vmem [resolvable:$true] %s329_s1 }
  0x37   : > { %1293 = dma.hbm_to_vmem [thread:$0]  (!%p1848_p6), %s328_s29, 128, %s330_s1, %s317_s14  }
  0x38   : > { %1299 = dma.hbm_to_vmem [thread:$0]  (!%p1848_p6), %s366_s4, 128, %s368_s5, %s337_s9  }
  0x39   : > { %s1882_s6 = sand.u32 (!%p1789_p3), 1, %s1673_s28  }
  0x3a   : > { %s1885_s1 = sshll.u32 (!%p1789_p3), %s1882_s6, 3  ;;  %s379_s27 = scalar_lea.sflag (!%p1789_p3), [#allocation6], %s1882_s6 }
  0x3b   : > { %s382_s19 = scalar_lea.vmem [#allocation5], %s1885_s1 }
  0x3c   : > { %1648 = dma.done.wait (%p1823_p12), %s379_s27, 128  }
  0x3d   : > { %1650 = vsyncadd (%p1823_p12), %s379_s27, 4294967168  ;;  %s388_s4 = sand.u32 1, %s1781_s11   ;;  %s392_s7 = scalar_lea.vmem [#allocation8], %s1885_s1 }
  0x3e   : > { %s389_s5 = scalar_lea.sflag [#allocation9], %s388_s4 }
  0x3f   : > { %1652 = dma.done.wait (%p1823_p12), %s389_s5, 256  }
  0x40   : > { %1654 = vsyncadd (%p1823_p12), %s389_s5, 4294967040  ;;  %s402_s9 = scalar_lea.vmem [#allocation10], %s1885_s1 }
  0x41   : > { %1656 = dma.done.wait (%p67_p1), [#allocation12], 1024  }
  0x42   : > { %1658 = vsyncadd (%p67_p1), [#allocation12], 4294966272  ;;  %v469_v0 = vld [vmem:[#allocation11 + $0x10] sm:$0xff]  ;;  %v470_v1 = vld [vmem:[#allocation11 + $0x18] sm:$0xff]  ;;  %s1695_s15 = smov 96   ;;  %vm487_vm0 = vcmask 261120  }
  0x43   : > { %v1375_v2 = vpack.i.bf16 %v469_v0, %v470_v1  ;;  %577 = vmatpush.msra.mxu2 %v470_v1  ;;  %v467_v3 = vld [vmem:[#allocation11] sm:$0xff]  ;;  %v468_v4 = vld [vmem:[#allocation11 + $0x8] sm:$0xff]  ;;  %v1904_v6 = vld [vmem:[%s382_s19] sm:$0xff]  ;;  %vm587_vm1 = vcmask 64512   ;;  %s1696_s11 = smov 104   ;;  %s1697_s25 = smov 112  }
  0x44   : > { %v1380_v5 = vpack.i.bf16 %v467_v3, %v468_v4  ;;  %v465_v13 = vld [vmem:[%s392_s7] sm:$0xff]  ;;  %s1698_s16 = smov 120   ;;  %s1699_s17 = smov 64   ;;  %v466_v33 = vld [vmem:[%s402_s9] sm:$0xff] }
  0x45   : > { %1376 = vrot.lane.b32.xlu0 %v1375_v2, %s1695_s15  ;;  %578 = vmatpush.msra.mxu2 %v469_v0  ;;  %s1237_s21 = sshll.u32 %s1882_s6, 5  ;;  %s1700_s3 = smov 8  }
  0x46   : > { %s1950_s20 = scalar_lea.vmem [#allocation15], %s1237_s21  ;;  %s1701_s13 = smov 16  }
  0x47   : > { %579 = vmatpush.msra.mxu2 %v468_v4  ;;  %s1702_s23 = smov 24   ;;  %s1264_s26 = sshll.u32 %s1681_s30, 5 }
  0x48   : > { %s1034_s14 = scalar_lea.hbm %s2045_s8, %s1264_s26  ;;  %s1035_s10 = sshll.u32 %s1950_s20, 4  ;;  %s1036_s10 = int_to_ptr.vmem [resolvable:$true] %s1035_s10 }
  0x49   : > { %580 = vmatpush.msra.mxu2 %v467_v3  ;;  %s1037_s24 = sshll.u32 %s1034_s14, 4  ;;  %s1007_s18 = scalar_lea.sflag [#allocation16], %s1882_s6  ;;  %s1038_s24 = int_to_ptr.hbm [resolvable:$true] %s1037_s24 }
  0x4a   : > { %1240 = vmatmul.msk.f32.vlgmr.msra.gmra.mxu2 %vm487_vm0, %v1904_v6  ;;  %s1581_s27 = sshra.s32 %s1038_s24, 4  ;;  %s1587_s7 = scalar_lea.hbm %s2045_s8, 64  ;;  %s1582_s27 = int_to_ptr.hbm [resolvable:$true] %s1581_s27 }
  0x4b   : > { %s1583_s19 = scalar_lea.hbm %s1582_s27, 32  ;;  %p1588_p6 = scmp.lt.s32.totalorder %s1582_s27, %s2045_s8 }
  0x4c   : > { %p1584_p1 = scmp.ne.s32.totalorder %s1582_s27, %s1583_s19  ;;  %p1589_p8 = scmp.lt.s32.totalorder %s1587_s7, %s1583_s19 }
  0x4d   : > { %1381 = vrot.lane.b32.xlu0 %v1380_v5, %s1695_s15 }
  0x4e   : > { %p1585_p3 = pnand %p1584_p1, %p1830_p4  ;;  %p1590_p10 = por %p1589_p8, %p1588_p6 }
  0x50   : > { %p1586_p5 = pneg %p1585_p3 }
  0x52   : > { %p1591_p11 = pnand %p1590_p10, %p1586_p5 }
  0xb7   : > { %v1377_v7 = vpop.permute.xlu0 %1376 }
  0xb8   : > { %v1378_v8 = vunpack.i.l.bf16 %v1377_v7  ;;  %v1379_v9 = vunpack.i.h.bf16 %v1377_v7 }
  0xba   : > { %503 = vmatpush.msra.mxu0 %v1378_v8 }
  0xbc   : > { %504 = vmatpush.msra.mxu0 %v1379_v9 }
  0xbf   : > { %v1382_v10 = vpop.permute.xlu0 %1381 }
  0xc0   : > { %v1383_v11 = vunpack.i.l.bf16 %v1382_v10  ;;  %v1384_v12 = vunpack.i.h.bf16 %v1382_v10 }
  0xc2   : > { %505 = vmatpush.msra.mxu0 %v1383_v11 }
  0xc4   : > { %506 = vmatpush.msra.mxu0 %v1384_v12 }
  0xc5   : > { %1238 = vmatmul.msk.f32.vlgmr.msra.gmra.mxu0 %vm487_vm0, %v465_v13 }
  0xcd   : > { %v582_v16 = vpop.f32.mrf.mxu2 }
 0x142   : > { %v508_v14 = vpop.f32.mrf.mxu0 }
 0x143   : > { %511 = vst.msk [vmem:[#allocation2] sm:$0xff] %vm487_vm0, %v508_v14 }
 0x14a   : > { %v843_v15 = vld [vmem:[#allocation2] sm:$0xff] }
 0x14b   : > { %848 = vrot.lane.b32.xlu0 %v843_v15, %s1696_s11  ;;  %758 = vrot.lane.b32.xlu1 %v843_v15, %s1697_s25 }
 0x14c   : > { %668 = vrot.lane.b32.xlu2 %v843_v15, %s1698_s16  ;;  %1241 = vmatpush.xpose.msk.msra.mxu3 %vm587_vm1, %v843_v15 }
 0x14f   : > { %1242 = vmatmul.msk.f32.vlgmr.msra.gmra.mxu3 %vm587_vm1, %v582_v16 }
 0x153   : > { %755 = vrot.lane.b32.xlu1 %v582_v16, %s1697_s25  ;;  %1391 = vrot.lane.b32.xlu0 %v1380_v5, %s1699_s17 }
 0x154   : > { %665 = vrot.lane.b32.xlu2 %v582_v16, %s1698_s16 }
 0x15b   : > { %845 = vrot.lane.b32.xlu1 %v582_v16, %s1696_s11 }
 0x15c   : > { %1386 = vrot.lane.b32.xlu2 %v1375_v2, %s1699_s17 }
 0x1a6   : > { %v669_v17 = vpop.permute.xlu2 %668 }
 0x1a7   : > { %1244 = vmatpush.xpose.msk.msrb.mxu0 %vm587_vm1, %v669_v17 }
 0x1ae   : > { %v666_v18 = vpop.permute.xlu2 %665 }
 0x1af   : > { %1245 = vmatmul.msk.f32.vlgmr.msrb.gmra.mxu0 %vm587_vm1, %v666_v18 }
 0x1b6   : > { %v1387_v25 = vpop.permute.xlu2 %1386 }
 0x1b7   : > { %v1388_v26 = vunpack.i.l.bf16 %v1387_v25  ;;  %v1389_v29 = vunpack.i.h.bf16 %v1387_v25 }
 0x1b9   : > { %547 = vmatpush.msra.mxu1 %v1388_v26 }
 0x1bb   : > { %548 = vmatpush.msra.mxu1 %v1389_v29 }
 0x1bd   : > { %v849_v19 = vpop.permute.xlu0 %848  ;;  %v759_v20 = vpop.permute.xlu1 %758 }
 0x1be   : > { %1248 = vmatpush.xpose.msk.msrb.mxu2 %vm587_vm1, %v759_v20  ;;  %1252 = vmatpush.xpose.msk.msra.mxu0 %vm587_vm1, %v849_v19 }
 0x1c5   : > { %v756_v21 = vpop.permute.xlu1 %755  ;;  %v1392_v28 = vpop.permute.xlu0 %1391 }
 0x1c6   : > { %1249 = vmatmul.msk.f32.vlgmr.msrb.gmra.mxu2 %vm587_vm1, %v756_v21  ;;  %v1393_v31 = vunpack.i.l.bf16 %v1392_v28  ;;  %v1394_v32 = vunpack.i.h.bf16 %v1392_v28 }
 0x1c8   : > { %549 = vmatpush.msra.mxu1 %v1393_v31 }
 0x1ca   : > { %550 = vmatpush.msra.mxu1 %v1394_v32 }
 0x1cb   : > { %1239 = vmatmul.msk.f32.vlgmr.msra.gmra.mxu1 %vm487_vm0, %v466_v33 }
 0x1cd   : > { %v846_v22 = vpop.permute.xlu1 %845 }
 0x1ce   : > { %1253 = vmatmul.msk.f32.vlgmr.msra.gmra.mxu0 %vm587_vm1, %v846_v22 }
 0x1d2   : > { %v611_v23 = vpop.f32.mrf.mxu3 }
 0x1d3   : > { %v614_v24 = vsel %vm587_vm1, %v611_v23, -inf }
 0x1d4   : > { %615 = vmax.xlane.f32.xlu1 %v614_v24 }
 0x22c   : > { %v691_v27 = vpop.f32.mrf.mxu0 }
 0x22d   : > { %v694_v30 = vsel %vm587_vm1, %v691_v27, -inf }
 0x22e   : > { %695 = vmax.xlane.f32.xlu2 %v694_v30 }
 0x247   : > { %v616_v34 = vpop.xlane.xlu1 %615 }
 0x248   : > { %v617_v35 = vsub.f32 %v611_v23, %v616_v34  ;;  %v552_v48 = vpop.f32.mrf.mxu1 }
 0x249   : > { %v781_v36 = vpop.f32.mrf.mxu2  ;;  %555 = vst.msk [vmem:[#allocation3] sm:$0xff] %vm487_vm0, %v552_v48 }
 0x24a   : > { %v618_v37 = vmul.f32 1.442695, %v617_v35  ;;  %v784_v38 = vsel %vm587_vm1, %v781_v36, -inf }
 0x24b   : > { %785 = vmax.xlane.f32.xlu0 %v784_v38  ;;  %v871_v39 = vpop.f32.mrf.mxu0 }
 0x24c   : > { %1397 = vpow2.f32 %v618_v37  ;;  %v874_v40 = vsel %vm587_vm1, %v871_v39, -inf }
 0x24d   : > { %875 = vmax.xlane.f32.xlu2 %v874_v40 }
 0x250   : > { %v664_v49 = vld [vmem:[#allocation3] sm:$0xff] }
 0x251   : > { %656 = vmatpush.msrb.mxu3 %v664_v49 }
 0x252   : > { %v1398_v41 = vpop.eup %1397 }
 0x253   : > { %v620_v42 = vsel %vm587_vm1, %v1398_v41, 0.0 }
 0x254   : > { %621 = vadd.xlane.f32.xlu1 %v620_v42 }
 0x2a1   : > { %v696_v43 = vpop.xlane.xlu2 %695 }
 0x2a2   : > { %v697_v44 = vsub.f32 %v691_v27, %v696_v43 }
 0x2a4   : > { %v698_v45 = vmul.f32 1.442695, %v697_v44 }
 0x2a6   : > { %1399 = vpow2.f32 %v698_v45 }
 0x2ac   : > { %v1934_v46 = vpop.eup %1399 }
 0x2ad   : > { %v700_v47 = vsel %vm587_vm1, %v1934_v46, 0.0 }
 0x2ae   : > { %701 = vadd.xlane.f32.xlu2 %v700_v47 }
 0x2be   : > { %v786_v50 = vpop.xlane.xlu0 %785 }
 0x2bf   : > { %v787_v51 = vsub.f32 %v781_v36, %v786_v50 }
 0x2c0   : > { %v876_v52 = vpop.xlane.xlu2 %875 }
 0x2c1   : > { %v788_v53 = vmul.f32 1.442695, %v787_v51  ;;  %v877_v54 = vsub.f32 %v871_v39, %v876_v52 }
 0x2c3   : > { %1401 = vpow2.f32 %v788_v53  ;;  %v878_v55 = vmul.f32 1.442695, %v877_v54  ;;  %v937_v53 = vld [vmem:[#allocation13 + $0x18] sm:$0xff]  ;;  %v936_v54 = vld [vmem:[#allocation13 + $0x10] sm:$0xff] }
 0x2c4   : > { %953 = vmatpush.msra.mxu2 %v937_v53 }
 0x2c5   : > { %1403 = vpow2.f32 %v878_v55  ;;  %v935_v55 = vld [vmem:[#allocation13 + $0x8] sm:$0xff] }
 0x2c6   : > { %719 = vrot.lane.b32.xlu2 %v664_v49, %s1698_s16  ;;  %954 = vmatpush.msra.mxu2 %v936_v54 }
 0x2c7   : > { %v622_v56 = vpop.xlane.xlu1 %621 }
 0x2c8   : > { %1405 = vrcp.f32 %v622_v56  ;;  %v634_v0 = vand.u32 2147483648, %v622_v56  ;;  %v632_v2 = vand.u32 2147483647, %v622_v56  ;;  %vm628_vm3 = vweird.f32 %v622_v56  ;;  %955 = vmatpush.msra.mxu2 %v935_v55 }
 0x2c9   : > { %v1940_v57 = vpop.eup %1401 }
 0x2ca   : > { %v790_v58 = vsel %vm587_vm1, %v1940_v57, 0.0  ;;  %v635_v4 = vor.u32 1.1754944e-38, %v634_v0  ;;  %vm633_vm5 = vcmp.eq.f32.partialorder %v632_v2, 8.507059e+37 }
 0x2cb   : > { %v1944_v59 = vpop.eup %1403  ;;  %791 = vadd.xlane.f32.xlu0 %v790_v58 }
 0x2cc   : > { %v880_v60 = vsel %vm587_vm1, %v1944_v59, 0.0 }
 0x2cd   : > { %881 = vadd.xlane.f32.xlu1 %v880_v60 }
 0x2ce   : > { %v1406_v61 = vpop.eup %1405 }
 0x2cf   : > { %v624_v62 = vmul.f32 %v1406_v61, %v622_v56  ;;  %vm629_vm2 = vweird.f32 %v1406_v61  ;;  %v934_v56 = vld [vmem:[#allocation13] sm:$0xff] }
 0x2d0   : > { %vm630_vm4 = vmor %vm628_vm3, %vm629_vm2  ;;  %956 = vmatpush.msra.mxu2 %v934_v56 }
 0x2d1   : > { %v625_v63 = vsub.f32 1.0, %v624_v62 }
 0x2d3   : > { %v626_v1 = vmul.f32 %v1406_v61, %v625_v63  ;;  %v1703_v63 = vmov 32.0  }
 0x2d5   : > { %v627_v3 = vadd.f32 %v1406_v61, %v626_v1 }
 0x2d7   : > { %v631_v5 = vsel %vm630_vm4, %v1406_v61, %v627_v3  ;;  %vm749_vm4 = vcmask 130112  }
 0x2d8   : > { %v636_v7 = vsel %vm633_vm5, %v635_v4, %v631_v5  ;;  %vm839_vm5 = vcmask 195712  }
 0x2d9   : > { %v637_v8 = vmul.f32 %v1398_v41, %v636_v7 }
 0x2db   : > { %1243 = vmatmul.msk.f32.vlgmr.msrb.gmra.mxu3 %vm587_vm1, %v637_v8  ;;  %662 = vst.msk [vmem:[%s1950_s20] sm:$0xff] %vm587_vm1, %v637_v8 }
 0x2df   : > { %809 = vrot.lane.b32.xlu0 %v664_v49, %s1697_s25 }
 0x2e6   : > { %899 = vrot.lane.b32.xlu1 %v664_v49, %s1696_s11 }
 0x321   : > { %v702_v9 = vpop.xlane.xlu2 %701 }
 0x322   : > { %1407 = vrcp.f32 %v702_v9  ;;  %v714_v14 = vand.u32 2147483648, %v702_v9  ;;  %v712_v16 = vand.u32 2147483647, %v702_v9  ;;  %vm708_vm7 = vweird.f32 %v702_v9 }
 0x324   : > { %v715_v18 = vor.u32 1.1754944e-38, %v714_v14  ;;  %vm713_vm9 = vcmp.eq.f32.partialorder %v712_v16, 8.507059e+37 }
 0x328   : > { %v1408_v10 = vpop.eup %1407 }
 0x329   : > { %v704_v11 = vmul.f32 %v1408_v10, %v702_v9  ;;  %v720_v12 = vpop.permute.xlu2 %719  ;;  %vm709_vm6 = vweird.f32 %v1408_v10 }
 0x32a   : > { %740 = vmatpush.msrb.mxu1 %v720_v12  ;;  %vm710_vm8 = vmor %vm708_vm7, %vm709_vm6 }
 0x32b   : > { %v705_v13 = vsub.f32 1.0, %v704_v11 }
 0x32d   : > { %v706_v15 = vmul.f32 %v1408_v10, %v705_v13 }
 0x32f   : > { %v707_v17 = vadd.f32 %v1408_v10, %v706_v15 }
 0x331   : > { %v711_v19 = vsel %vm710_vm8, %v1408_v10, %v707_v17 }
 0x332   : > { %v716_v20 = vsel %vm713_vm9, %v715_v18, %v711_v19 }
 0x333   : > { %v717_v21 = vmul.f32 %v1934_v46, %v716_v20 }
 0x335   : > { %1246 = vmatmul.msk.f32.vlgmr.msrb.gmra.mxu1 %vm587_vm1, %v717_v21  ;;  %1247 = vst.msk [vmem:[%s1950_s20 + $0x8] sm:$0xff] %vm587_vm1, %v717_v21 }
 0x33e   : > { %v792_v22 = vpop.xlane.xlu0 %791 }
 0x33f   : > { %1409 = vrcp.f32 %v792_v22  ;;  %v804_v29 = vand.u32 2147483648, %v792_v22  ;;  %v802_v31 = vand.u32 2147483647, %v792_v22  ;;  %vm798_vm11 = vweird.f32 %v792_v22 }
 0x340   : > { %v882_v23 = vpop.xlane.xlu1 %881 }
 0x341   : > { %1411 = vrcp.f32 %v882_v23  ;;  %v894_v33 = vand.u32 2147483648, %v882_v23  ;;  %v892_v36 = vand.u32 2147483647, %v882_v23  ;;  %v805_v37 = vor.u32 1.1754944e-38, %v804_v29 }
 0x342   : > { %vm803_vm14 = vcmp.eq.f32.partialorder %v802_v31, 8.507059e+37  ;;  %vm888_vm15 = vweird.f32 %v882_v23  ;;  %1413 = vrcp.f32 %v1703_v63 }
 0x343   : > { %v895_v41 = vor.u32 1.1754944e-38, %v894_v33  ;;  %vm893_vm3 = vcmp.eq.f32.partialorder %v892_v36, 8.507059e+37 }
 0x345   : > { %v1410_v24 = vpop.eup %1409 }
 0x346   : > { %v794_v25 = vmul.f32 %v1410_v24, %v792_v22  ;;  %vm799_vm10 = vweird.f32 %v1410_v24 }
 0x347   : > { %v1412_v26 = vpop.eup %1411  ;;  %vm800_vm13 = vmor %vm798_vm11, %vm799_vm10 }
 0x348   : > { %v795_v27 = vsub.f32 1.0, %v794_v25  ;;  %v884_v28 = vmul.f32 %v1412_v26, %v882_v23  ;;  %vm889_vm12 = vweird.f32 %v1412_v26  ;;  %v1414_v0 = vpop.eup %1413 }
 0x349   : > { %vm890_vm2 = vmor %vm888_vm15, %vm889_vm12  ;;  %v965_v1 = vmul.f32 32.0, %v1414_v0  ;;  %vm969_vm6 = vweird.f32 %v1414_v0 }
 0x34a   : > { %v796_v30 = vmul.f32 %v1410_v24, %v795_v27  ;;  %v885_v32 = vsub.f32 1.0, %v884_v28 }
 0x34b   : > { %v966_v2 = vsub.f32 1.0, %v965_v1 }
 0x34c   : > { %v797_v34 = vadd.f32 %v1410_v24, %v796_v30  ;;  %v886_v35 = vmul.f32 %v1412_v26, %v885_v32 }
 0x34d   : > { %v967_v3 = vmul.f32 %v1414_v0, %v966_v2 }
 0x34e   : > { %v801_v38 = vsel %vm800_vm13, %v1410_v24, %v797_v34  ;;  %v887_v39 = vadd.f32 %v1412_v26, %v886_v35 }
 0x34f   : > { %v806_v40 = vsel %vm803_vm14, %v805_v37, %v801_v38  ;;  %v968_v4 = vadd.f32 %v1414_v0, %v967_v3 }
 0x350   : > { %v891_v42 = vsel %vm890_vm2, %v1412_v26, %v887_v39  ;;  %v807_v43 = vmul.f32 %v1940_v57, %v806_v40 }
 0x351   : > { %v896_v44 = vsel %vm893_vm3, %v895_v41, %v891_v42  ;;  %v810_v45 = vpop.permute.xlu0 %809  ;;  %v970_v5 = vsel %vm969_vm6, %v1414_v0, %v968_v4 }
 0x352   : > { %830 = vmatpush.msra.mxu3 %v810_v45  ;;  %1251 = vst.msk [vmem:[%s1950_s20 + $0x10] sm:$0xff] %vm587_vm1, %v807_v43  ;;  %v897_v46 = vmul.f32 %v1944_v59, %v896_v44 }
 0x353   : > { %1250 = vmatmul.msk.f32.vlgmr.msra.gmra.mxu3 %vm587_vm1, %v807_v43 }
 0x354   : > { %1255 = vst.msk [vmem:[%s1950_s20 + $0x18] sm:$0xff] %vm587_vm1, %v897_v46 }
 0x358   : > { %v900_v47 = vpop.permute.xlu1 %899 }
 0x359   : > { %920 = vmatpush.msra.mxu1 %v900_v47 }
 0x35a   : > { %1254 = vmatmul.msk.f32.vlgmr.msra.gmra.mxu1 %vm587_vm1, %v897_v46 }
 0x35e   : > { %v658_v48 = vpop.f32.mrf.mxu3 }
 0x35f   : > { %661 = vst.msk [vmem:[#allocation4] sm:$0xff] %vm587_vm1, %v658_v48  ;;  %vm929_vm1 = vcmask 261312  }
 0x3b2   : > { %v742_v49 = vpop.f32.mrf.mxu1 }
 0x3b3   : > { %746 = vrot.lane.b32.xlu0 %v742_v49, %s1700_s3 }
 0x3d6   : > { %v832_v50 = vpop.f32.mrf.mxu3 }
 0x3d7   : > { %836 = vrot.lane.b32.xlu2 %v832_v50, %s1701_s13  ;;  %v922_v51 = vpop.f32.mrf.mxu1 }
 0x3d8   : > { %926 = vrot.lane.b32.xlu1 %v922_v51, %s1702_s23 }
 0x425   : > { %v747_v52 = vpop.permute.xlu0 %746 }
 0x426   : > { %750 = vst.msk [vmem:[#allocation4] sm:$0xff] %vm749_vm4, %v747_v52 }
 0x431   : > { %v837_v57 = vpop.permute.xlu2 %836 }
 0x432   : > { %840 = vst.msk [vmem:[#allocation4] sm:$0xff] %vm839_vm5, %v837_v57 }
 0x44a   : > { %v927_v58 = vpop.permute.xlu1 %926 }
 0x44b   : > { %930 = vst.msk [vmem:[#allocation4] sm:$0xff] %vm929_vm1, %v927_v58 }
 0x452   : > { %v933_v59 = vld [vmem:[#allocation4] sm:$0xff] }
 0x453   : > { %1256 = vmatmul.msk.f32.vlgmr.msra.gmra.mxu2 %vm487_vm0, %v933_v59 }
 0x4d6   : > { %v958_v60 = vpop.f32.mrf.mxu2 }
 0x4d7   : > { %v959_v61 = vadd.f32 %v958_v60, %v1904_v6 }
 0x4d9   : > { %v961_v62 = vsel %vm487_vm0, %v959_v61, 0.0 }
 0x4da   : > { %962 = vadd.xlane.f32.xlu0 %v961_v62 }
 0x54d   : > { %v963_v7 = vpop.xlane.xlu0 %962 }
 0x54e   : > { %v971_v8 = vmul.f32 %v970_v5, %v963_v7 }
 0x550   : > { %v972_v9 = vsub.f32 %v959_v61, %v971_v8 }
 0x552   : > { %v973_v6 = vmul.f32 %v972_v9, %v972_v9 }
 0x554   : > { %v974_v10 = vsel %vm487_vm0, %v973_v6, 0.0 }
 0x555   : > { %975 = vadd.xlane.f32.xlu2 %v974_v10 }
 0x556   : > { %1594 = shalt.err (!%p1591_p11)
}
 0x557   : > { %s1704_s11 = smov 128   ;;  %s1259_s25 = sshll.u32 %s1681_s30, 3 }
 0x558   : > { %1280 = dma.vmem_to_hbm [thread:$0]  (%p1830_p4), %s1036_s10, 512, %s1038_s24, %s1007_s18, %s1704_s11, %s1704_s11, %s1700_s3  }
 0x559   : > { %s2081_s21 = sld [smem:[#allocation32_spill]]  ;;  %s453_s30 = scalar_lea.vmem [#allocation14], %s1885_s1 }
 0x55a   : > { %s2082_s13 = sld [smem:[#allocation34_spill]]  ;;  %s1020_s14 = sshll.u32 %s453_s30, 4  ;;  %s1021_s14 = int_to_ptr.vmem [resolvable:$true] %s1020_s14 }
 0x55b   : > { %s2083_s22 = sld [smem:[#allocation33_spill]]  ;;  %s1002_s24 = scalar_lea.sflag [#allocation7], %s1882_s6 }
 0x55f   : > { %v1395_v20 = vld [vmem:[%s2081_s21] ss:$0 sm:$0xff] }
 0x560   : > { %s1018_s23 = scalar_lea.hbm %s2082_s13, %s1259_s25  ;;  %s1615_s1 = scalar_lea.hbm %s2082_s13, 16 }
 0x561   : > { %v1396_v23 = vld [vmem:[%s2083_s22] ss:$0 sm:$0xff]  ;;  %s1022_s10 = sshll.u32 %s1018_s23, 4  ;;  %s1023_s10 = int_to_ptr.hbm [resolvable:$true] %s1022_s10 }
 0x562   : > { %s1609_s18 = sshra.s32 %s1023_s10, 4  ;;  %s1610_s18 = int_to_ptr.hbm [resolvable:$true] %s1609_s18 }
 0x563   : > { %s1611_s27 = scalar_lea.hbm %s1610_s18, 8  ;;  %p1616_p2 = scmp.lt.s32.totalorder %s1610_s18, %s2082_s13 }
 0x564   : > { %p1612_p12 = scmp.ne.s32.totalorder %s1610_s18, %s1611_s27  ;;  %p1617_p7 = scmp.lt.s32.totalorder %s1615_s1, %s1611_s27 }
 0x566   : > { %p1613_p13 = pnand %p1612_p12, %p1830_p4  ;;  %p1618_p1 = por %p1617_p7, %p1616_p2 }
 0x568   : > { %p1614_p0 = pneg %p1613_p13 }
 0x56a   : > { %p1619_p3 = pnand %p1618_p1, %p1614_p0 }
 0x5c8   : > { %v976_v11 = vpop.xlane.xlu2 %975 }
 0x5c9   : > { %v977_v12 = vmul.f32 %v976_v11, %v970_v5 }
 0x5cb   : > { %v978_v13 = vadd.f32 1e-06, %v977_v12 }
 0x5cd   : > { %1415 = vrsqrt.f32 %v978_v13  ;;  %vm985_vm8 = vweird.f32 %v978_v13 }
 0x5d3   : > { %v1416_v14 = vpop.eup %1415 }
 0x5d4   : > { %v980_v15 = vmul.f32 %v1416_v14, %v978_v13  ;;  %vm986_vm7 = vweird.f32 %v1416_v14 }
 0x5d5   : > { %vm987_vm9 = vmor %vm985_vm8, %vm986_vm7 }
 0x5d6   : > { %v981_v16 = vmul.f32 %v1416_v14, %v980_v15 }
 0x5d8   : > { %v982_v17 = vmul.f32 0.5, %v981_v16 }
 0x5da   : > { %v983_v18 = vsub.f32 1.5, %v982_v17 }
 0x5dc   : > { %v984_v19 = vmul.f32 %v1416_v14, %v983_v18 }
 0x5de   : > { %v988_v21 = vsel %vm987_vm9, %v1416_v14, %v984_v19 }
 0x5df   : > { %v989_v22 = vmul.f32 %v988_v21, %v972_v9 }
 0x5e1   : > { %v994_v24 = vmul.f32 %v1395_v20, %v989_v22 }
 0x5e3   : > { %v999_v25 = vadd.f32 %v1396_v23, %v994_v24 }
 0x5e5   : > { %1000 = vst.msk [vmem:[%s453_s30] sm:$0xff] %vm487_vm0, %v999_v25 }
 0x5e6   : > { %1622 = shalt.err (!%p1619_p3)
}
 0x5e7   : > { %1279 = dma.vmem_to_hbm [thread:$0]  (%p1830_p4), %s1021_s14, 128, %s1023_s10, %s1002_s24  }
 0x5e8 PF: > { %s2084_s6 = sld [smem:[#allocation22_spill]] }
 0x5e9   : > { %s2086_s15 = sld [smem:[#allocation25_spill]] }
 0x5ee   : > { %s1052_s11 = sand.u32 1, %s2084_s6  }
 0x5ef   : > { %p2087_p5 = scmp.ge.s32.totalorder %s2086_s15, 2  ;;  %s1053_s25 = scalar_lea.sflag [#allocation7], %s1052_s11 }
 0x5f1   : > { %p1301_p6 = pnand %p2087_p5, %p1838_p9 }
 0x5f3   : > { %p1302_p8 = pneg %p1301_p6 }
 0x5f5   : > { %1660 = dma.done.wait (%p1302_p8), %s1053_s25, 128  }
 0x5f6   : > { %1662 = vsyncadd (%p1302_p8), %s1053_s25, 4294967168  ;;  %s1063_s16 = scalar_lea.sflag [#allocation16], %s1052_s11 }
 0x5f7   : > { %1664 = dma.done.wait (%p1302_p8), %s1063_s16, 512  }
 0x5f8   : > { %1666 = vsyncadd (%p1302_p8), %s1063_s16, 4294966784  ;;  %s32_s10 = sadd.s32 1, %s2086_s15   ;;  %s2088_s12 = sld [smem:[#allocation23_spill]] }
 0x5f9   : > { %p29_p10 = scmp.ge.s32.totalorder %s32_s10, 4   ;;  %s2089_s29 = sld [smem:[#allocation27_spill]] }
 0x5fa   : > { %s2090_s30 = sld [smem:[#allocation24_spill]]  ;;  %s2092_s27 = smov %s1673_s28 }
 0x5fb   : > { %s2091_s9 = sld [smem:[#allocation26_spill]]  ;;  %31 = sbr.rel (!%p29_p10) target bundleno = 18 (0x12), region = 149 }
 0x5fe   : > { %s2093_s28 = smov %s2088_s12 }
 0x600   :  { %1069 = vsyncpa [#allocation6], 1 }
 0x601   :  { %1071 = vsyncpa [#allocation6 + $0x1], 1 }
 0x602   :  { %1072 = vsyncpa [#allocation9], 1 }
 0x603   :  { %1074 = vsyncpa [#allocation9 + $0x1], 1 }
 0x604   :  { %1075 = vsyncpa [#allocation12], 1 }
 0x605   :  { %1076 = vsyncpa [#allocation7], 1 }
 0x606   :  { %1078 = vsyncpa [#allocation7 + $0x1], 1 }
 0x607   :  { %1079 = vsyncpa [#allocation16], 1 }
 0x608   :  { %1081 = vsyncpa [#allocation16 + $0x1], 1 }

</bundles_post_ra>
